<compile_context>
chip_gen: v5e
topology: v5e:2x2
jax: 0.10.0
libtpu: 0.0.40
codegen_flags: <defaults>
</compile_context>

<pallas_src>
import jax
import jax.numpy as jnp
import numpy as np
from jax.experimental import pallas as pl
from jax.experimental.pallas import tpu as pltpu

# ---------------- static configuration ----------------
B = 2              # batch (folded onto lanes)
CIN = 1            # in_channels
SWS = 16           # signal_window_size -> kernel_size = 3
K = 3
C0, C1 = 4, 8      # out_channels
G = 64             # 8x8 BES spatial channels
LANES = B * G      # 128 dense lanes
L1 = SWS - K + 1   # 14
P1 = L1 // 2       # 7
L2 = P1 - K + 1    # 5
P2 = L2 // 2       # 2
F = C1 * P2        # 16 == diag_fc_units[0]
D1, D2 = 16, 8     # diag_fc_units[1], diag_fc_units[2]
H = 32             # detect_fc_units[1]
O = 1              # detect_fc_units[2]
NEG_SLOPE = 0.05   # nn.LeakyReLU(negative_slope=0.05) per the module spec

# Packed per-channel parameter buffer layout: sections start on 8-row boundaries.
_SECT_SIZES = (
    ("W1", K * CIN * C0), ("B1", C0), ("W2", K * C0 * C1), ("B2", C1),
    ("FW1", F * D1), ("FB1", D1), ("FW2", D1 * D2), ("FB2", D2),
    ("FW3", D2), ("FB3", 1),
)
OFF = {}
_o = 0
for _name, _sz in _SECT_SIZES:
    OFF[_name] = _o
    _o += -(-_sz // 8) * 8
PP_ROWS = _o  # 552


# ---------------- the fused kernel ----------------
def mts_cnn_kernel(x_ref, pp_ref, head_ref, out_ref):
    # ---- pack batch onto lanes: rows = CIN*SWS (time), lanes = b*G + g ----
    xk = jnp.concatenate([x_ref[b] for b in range(B)], axis=-1)       # (CIN*SWS, LANES)

    def wrows(off, n):
        """Static (n, LANES) slab from the packed per-channel parameter buffer."""
        return pp_ref[pl.ds(off, n), :]

    def conv_lrelu_pool(get_h, w_off, b_off, cin, cout, lin):
        """Conv1d(valid) -> LeakyReLU(0.05) -> MaxPool1d(2), lane-parallel over B*G."""
        lout = lin - K + 1
        acc = jnp.zeros((lout, cout, LANES), jnp.float32)
        for k in range(K):                       # static tap loop
            for ci in range(cin):                # static input-channel loop
                hs = get_h(k, ci)                                      # (lout, LANES)
                wk = wrows(w_off + (k * cin + ci) * cout, cout)        # (cout, LANES)
                acc = acc + hs[:, None, :] * wk[None, :, :]
        acc = acc + wrows(b_off, cout)[None, :, :]
        acc = jnp.where(acc > 0, acc, NEG_SLOPE * acc)                 # LeakyReLU(0.05)
        half = lout // 2                                               # MaxPool1d(2), floor
        return jnp.max(acc[:2 * half].reshape(half, 2, cout, LANES), axis=1)

    # conv block 1: (SWS, LANES) -> (P1, C0, LANES)
    h1 = conv_lrelu_pool(lambda k, ci: xk[ci * SWS + k: ci * SWS + k + L1, :],
                         OFF["W1"], OFF["B1"], CIN, C0, SWS)
    # conv block 2: -> (P2, C1, LANES)
    h2 = conv_lrelu_pool(lambda k, ci: h1[k:k + L2, ci, :],
                         OFF["W2"], OFF["B2"], C0, C1, P1)

    # ---- per-channel intermediate_fc (lane-parallel; weights streamed per feature) ----
    z1 = wrows(OFF["FB1"], D1)                                         # (D1, LANES)
    for c in range(C1):                     # PyTorch flatten order: f = c*P2 + p
        for p in range(P2):
            f = c * P2 + p
            z1 = z1 + h2[p, c:c + 1, :] * wrows(OFF["FW1"] + f * D1, D1)
    z2 = wrows(OFF["FB2"], D2)                                         # (D2, LANES)
    for d1 in range(D1):
        z2 = z2 + z1[d1:d1 + 1, :] * wrows(OFF["FW2"] + d1 * D2, D2)
    lg = (jnp.sum(z2 * wrows(OFF["FW3"], D2), axis=0, keepdims=True)
          + wrows(OFF["FB3"], 1))                                      # (1, LANES) logits

    # ---- detection head: Linear(G,H) -> Linear(H,1) on the VPU/XLU (no MXU) ----
    hp = head_ref[...]                                                 # (H, LANES)
    dw1 = hp[:, :G]                                                    # (H, G)
    db1 = hp[:, G:G + 1]                                               # (H, 1)
    dw2 = hp[:, G + 1:G + 2]                                           # (H, 1)
    db2 = hp[0:1, G + 2:G + 3]                                         # (1, 1)
    outs = []
    for b in range(B):                                                 # static, B = 2
        lgb = lg[:, b * G:(b + 1) * G]                                 # (1, G) batch b
        zh = jnp.sum(lgb * dw1, axis=1, keepdims=True) + db1           # (H, 1)
        outs.append(jnp.sum(zh * dw2, axis=0, keepdims=True) + db2)    # (1, 1)
    out_ref[...] = jnp.concatenate(outs, axis=0)                       # (B, O)


# ---------------- wrapper: one-time parameter packing + pallas_call ----------------
def pack_params(pt_params):
    """PyTorch-layout params -> (packed per-channel slab, packed head slab)."""
    (w1, b1, w2, b2, fw1, fb1, fw2, fb2, fw3, fb3, dw1, db1, dw2, db2) = pt_params
    sections = {
        "W1": jnp.transpose(w1, (3, 2, 1, 0)).reshape(K * CIN * C0, G),   # row=(k*CIN+ci)*C0+co
        "B1": b1.T,
        "W2": jnp.transpose(w2, (3, 2, 1, 0)).reshape(K * C0 * C1, G),    # row=(k*C0+ci)*C1+co
        "B2": b2.T,
        "FW1": jnp.transpose(fw1, (2, 1, 0)).reshape(F * D1, G),          # row=f*D1+d (channel-major flatten)
        "FB1": fb1.T,
        "FW2": jnp.transpose(fw2, (2, 1, 0)).reshape(D1 * D2, G),         # row=d1*D2+d2
        "FB2": fb2.T,
        "FW3": fw3[:, 0, :].T,
        "FB3": fb3.T,
    }
    pp = jnp.zeros((PP_ROWS, LANES), jnp.float32)
    for name, rows in sections.items():
        # tile over the batch copies of the lane axis: lane = b*G + g
        pp = pp.at[OFF[name]:OFF[name] + rows.shape[0], :].set(jnp.tile(rows, (1, B)))

    head = jnp.zeros((H, LANES), jnp.float32)
    head = head.at[:, :G].set(dw1)            # (H, G)
    head = head.at[:, G].set(db1)             # (H,)
    head = head.at[:, G + 1].set(dw2[0])      # (H,)
    head = head.at[0, G + 2].set(db2[0])      # scalar
    return pp, head


@jax.jit
def mts_cnn_forward(x, pp, head):
    # x: (B, CIN, SWS, 8, 8). torch.flatten(x, 3) == merge of the trailing 8x8 grid; the
    # (CIN, SWS) merge is also free (row-major reshape) -- no wrapper transpose needed.
    assert x.shape[0] == B
    xb = x.reshape(B, CIN * SWS, G)
    vmem = pl.BlockSpec(memory_space=pltpu.MemorySpace.VMEM)
    return pl.pallas_call(
        mts_cnn_kernel,
        out_shape=jax.ShapeDtypeStruct((B, O), jnp.float32),
        in_specs=[vmem, vmem, vmem],
        out_specs=vmem,
    )(xb, pp, head)


# ---------------- numpy reference (PyTorch semantics) ----------------
def ref_forward(x, pt):
    x = np.asarray(x, np.float64)
    w1, b1, w2, b2, fw1, fb1, fw2, fb2, fw3, fb3, dw1, db1, dw2, db2 = \
        [np.asarray(p, np.float64) for p in pt]

    def conv1d(h, w, b):                                  # h (B, Cin, Lin), w (Cout, Cin, K)
        Bb, _, Lin = h.shape
        Cout, _, Kk = w.shape
        L = Lin - Kk + 1
        out = np.zeros((Bb, Cout, L))
        for l in range(L):
            out[:, :, l] = np.einsum('bck,ock->bo', h[:, :, l:l + Kk], w)
        return out + b[None, :, None]

    def lrelu(h):
        return np.where(h > 0, h, NEG_SLOPE * h)

    def mpool(h):
        half = h.shape[-1] // 2
        return h[..., :2 * half].reshape(h.shape[0], h.shape[1], half, 2).max(-1)

    xf = x.reshape(x.shape[0], CIN, SWS, G)
    logits = []
    for g in range(G):
        xi = xf[..., g]                                   # (B, CIN, SWS)
        h = mpool(lrelu(conv1d(xi, w1[g], b1[g])))
        h = mpool(lrelu(conv1d(h, w2[g], b2[g])))
        h = h.reshape(h.shape[0], -1)                     # channel-major flatten
        h = h @ fw1[g].T + fb1[g]
        h = h @ fw2[g].T + fb2[g]
        h = h @ fw3[g].T + fb3[g]
        logits.append(h)
    lg = np.concatenate(logits, axis=1)                   # (B, G)
    z = lg @ dw1.T + db1
    z = z @ dw2.T + db2
    return z


if __name__ == "__main__":
    key = jax.random.PRNGKey(0)
    keys = jax.random.split(key, 16)

    def rnd(k, shape):
        return 0.1 * jax.random.normal(k, shape, jnp.float32)

    # PyTorch-layout parameters (deterministic synthetic init)
    w1_pt = rnd(keys[0], (G, C0, CIN, K)); b1_pt = rnd(keys[1], (G, C0))
    w2_pt = rnd(keys[2], (G, C1, C0, K)); b2_pt = rnd(keys[3], (G, C1))
    fw1_pt = rnd(keys[4], (G, D1, F));    fb1_pt = rnd(keys[5], (G, D1))
    fw2_pt = rnd(keys[6], (G, D2, D1));   fb2_pt = rnd(keys[7], (G, D2))
    fw3_pt = rnd(keys[8], (G, 1, D2));    fb3_pt = rnd(keys[9], (G, 1))
    dw1_pt = rnd(keys[10], (H, G));       db1_pt = rnd(keys[11], (H,))
    dw2_pt = rnd(keys[12], (O, H));       db2_pt = rnd(keys[13], (O,))
    x = jax.random.normal(keys[14], (B, CIN, SWS, 8, 8), jnp.float32)

    pt_params = (w1_pt, b1_pt, w2_pt, b2_pt, fw1_pt, fb1_pt, fw2_pt, fb2_pt,
                 fw3_pt, fb3_pt, dw1_pt, db1_pt, dw2_pt, db2_pt)

    # pack once, outside the hot path (2 parameter DMAs + 1 input DMA per invocation)
    pp, head = pack_params(pt_params)

    out = jax.block_until_ready(mts_cnn_forward(x, pp, head))
    assert out.shape == (B, O), out.shape

    ref = ref_forward(x, pt_params)
    if not np.allclose(np.asarray(out), ref, rtol=1e-4, atol=1e-4):
        raise AssertionError(
            f"kernel/reference mismatch, max abs err = {np.abs(np.asarray(out) - ref).max()}")
    print("KERNEL_OK")
</pallas_src>

<mosaic_0001>
module attributes {stable_mosaic.version = 11 : i64} {
  func.func @mts_cnn_kernel(%arg0: memref<2x16x64xf32, #tpu.memory_space<vmem>>, %arg1: memref<552x128xf32, #tpu.memory_space<vmem>>, %arg2: memref<32x128xf32, #tpu.memory_space<vmem>>, %arg3: memref<2x1xf32, #tpu.memory_space<vmem>>) attributes {dimension_semantics = [], scalar_prefetch = 0 : i64, scratch_operands = 0 : i64, tpu.core_type = #tpu.core_type<tc>} {
    %c0 = arith.constant 0 : index
    %c0_0 = arith.constant 0 : index
    %c0_1 = arith.constant 0 : index
    %0 = vector.load %arg0[%c0, %c0_0, %c0_1] : memref<2x16x64xf32, #tpu.memory_space<vmem>>, vector<1x16x64xf32>
    %1 = vector.shape_cast %0 : vector<1x16x64xf32> to vector<16x64xf32>
    %c1 = arith.constant 1 : index
    %c0_2 = arith.constant 0 : index
    %c0_3 = arith.constant 0 : index
    %2 = vector.load %arg0[%c1, %c0_2, %c0_3] : memref<2x16x64xf32, #tpu.memory_space<vmem>>, vector<1x16x64xf32>
    %3 = vector.shape_cast %2 : vector<1x16x64xf32> to vector<16x64xf32>
    %4 = tpu.concatenate %1, %3 in 1 : vector<16x64xf32>, vector<16x64xf32> -> vector<16x128xf32>
    %cst = arith.constant 0.000000e+00 : f32
    %5 = vector.broadcast %cst : f32 to vector<14x4x128xf32>
    %6 = vector.extract_strided_slice %4 {offsets = [0, 0], sizes = [14, 128], strides = [1, 1]} : vector<16x128xf32> to vector<14x128xf32>
    %c0_4 = arith.constant 0 : index
    %c0_5 = arith.constant 0 : index
    %7 = vector.load %arg1[%c0_4, %c0_5] : memref<552x128xf32, #tpu.memory_space<vmem>>, vector<4x128xf32>
    %8 = vector.shape_cast %6 : vector<14x128xf32> to vector<14x1x128xf32>
    %9 = vector.shape_cast %7 : vector<4x128xf32> to vector<1x4x128xf32>
    %10 = vector.broadcast %8 : vector<14x1x128xf32> to vector<14x4x128xf32>
    %11 = vector.broadcast %9 : vector<1x4x128xf32> to vector<14x4x128xf32>
    %12 = arith.mulf %10, %11 : vector<14x4x128xf32>
    %13 = arith.addf %5, %12 : vector<14x4x128xf32>
    %14 = vector.extract_strided_slice %4 {offsets = [1, 0], sizes = [14, 128], strides = [1, 1]} : vector<16x128xf32> to vector<14x128xf32>
    %c4 = arith.constant 4 : index
    %c0_6 = arith.constant 0 : index
    %15 = vector.load %arg1[%c4, %c0_6] : memref<552x128xf32, #tpu.memory_space<vmem>>, vector<4x128xf32>
    %16 = vector.shape_cast %14 : vector<14x128xf32> to vector<14x1x128xf32>
    %17 = vector.shape_cast %15 : vector<4x128xf32> to vector<1x4x128xf32>
    %18 = vector.broadcast %16 : vector<14x1x128xf32> to vector<14x4x128xf32>
    %19 = vector.broadcast %17 : vector<1x4x128xf32> to vector<14x4x128xf32>
    %20 = arith.mulf %18, %19 : vector<14x4x128xf32>
    %21 = arith.addf %13, %20 : vector<14x4x128xf32>
    %22 = vector.extract_strided_slice %4 {offsets = [2, 0], sizes = [14, 128], strides = [1, 1]} : vector<16x128xf32> to vector<14x128xf32>
    %c8 = arith.constant 8 : index
    %c0_7 = arith.constant 0 : index
    %23 = vector.load %arg1[%c8, %c0_7] : memref<552x128xf32, #tpu.memory_space<vmem>>, vector<4x128xf32>
    %24 = vector.shape_cast %22 : vector<14x128xf32> to vector<14x1x128xf32>
    %25 = vector.shape_cast %23 : vector<4x128xf32> to vector<1x4x128xf32>
    %26 = vector.broadcast %24 : vector<14x1x128xf32> to vector<14x4x128xf32>
    %27 = vector.broadcast %25 : vector<1x4x128xf32> to vector<14x4x128xf32>
    %28 = arith.mulf %26, %27 : vector<14x4x128xf32>
    %29 = arith.addf %21, %28 : vector<14x4x128xf32>
    %c16 = arith.constant 16 : index
    %c0_8 = arith.constant 0 : index
    %30 = vector.load %arg1[%c16, %c0_8] : memref<552x128xf32, #tpu.memory_space<vmem>>, vector<4x128xf32>
    %31 = vector.shape_cast %30 : vector<4x128xf32> to vector<1x4x128xf32>
    %32 = vector.broadcast %31 : vector<1x4x128xf32> to vector<14x4x128xf32>
    %33 = arith.addf %29, %32 : vector<14x4x128xf32>
    %cst_9 = arith.constant 0.000000e+00 : f32
    %34 = vector.broadcast %cst_9 : f32 to vector<14x4x128xf32>
    %35 = arith.cmpf ogt, %33, %34 : vector<14x4x128xf32>
    %cst_10 = arith.constant 5.000000e-02 : f32
    %36 = vector.broadcast %cst_10 : f32 to vector<14x4x128xf32>
    %37 = arith.mulf %36, %33 : vector<14x4x128xf32>
    %38 = arith.select %35, %33, %37 : vector<14x4x128xi1>, vector<14x4x128xf32>
    %39 = vector.shape_cast %38 : vector<14x4x128xf32> to vector<7x2x4x128xf32>
    %cst_11 = arith.constant dense<0xFF800000> : vector<7x4x128xf32>
    %40 = vector.multi_reduction <maximumf>, %39, %cst_11 [1] : vector<7x2x4x128xf32> to vector<7x4x128xf32>
    %cst_12 = arith.constant 0.000000e+00 : f32
    %41 = vector.broadcast %cst_12 : f32 to vector<5x8x128xf32>
    %42 = vector.extract_strided_slice %40 {offsets = [0, 0, 0], sizes = [5, 1, 128], strides = [1, 1, 1]} : vector<7x4x128xf32> to vector<5x1x128xf32>
    %43 = vector.shape_cast %42 : vector<5x1x128xf32> to vector<5x128xf32>
    %c24 = arith.constant 24 : index
    %c0_13 = arith.constant 0 : index
    %44 = vector.load %arg1[%c24, %c0_13] : memref<552x128xf32, #tpu.memory_space<vmem>>, vector<8x128xf32>
    %45 = vector.shape_cast %43 : vector<5x128xf32> to vector<5x1x128xf32>
    %46 = vector.shape_cast %44 : vector<8x128xf32> to vector<1x8x128xf32>
    %47 = vector.broadcast %45 : vector<5x1x128xf32> to vector<5x8x128xf32>
    %48 = vector.broadcast %46 : vector<1x8x128xf32> to vector<5x8x128xf32>
    %49 = arith.mulf %47, %48 : vector<5x8x128xf32>
    %50 = arith.addf %41, %49 : vector<5x8x128xf32>
    %51 = vector.extract_strided_slice %40 {offsets = [0, 1, 0], sizes = [5, 1, 128], strides = [1, 1, 1]} : vector<7x4x128xf32> to vector<5x1x128xf32>
    %52 = vector.shape_cast %51 : vector<5x1x128xf32> to vector<5x128xf32>
    %c32 = arith.constant 32 : index
    %c0_14 = arith.constant 0 : index
    %53 = vector.load %arg1[%c32, %c0_14] : memref<552x128xf32, #tpu.memory_space<vmem>>, vector<8x128xf32>
    %54 = vector.shape_cast %52 : vector<5x128xf32> to vector<5x1x128xf32>
    %55 = vector.shape_cast %53 : vector<8x128xf32> to vector<1x8x128xf32>
    %56 = vector.broadcast %54 : vector<5x1x128xf32> to vector<5x8x128xf32>
    %57 = vector.broadcast %55 : vector<1x8x128xf32> to vector<5x8x128xf32>
    %58 = arith.mulf %56, %57 : vector<5x8x128xf32>
    %59 = arith.addf %50, %58 : vector<5x8x128xf32>
    %60 = vector.extract_strided_slice %40 {offsets = [0, 2, 0], sizes = [5, 1, 128], strides = [1, 1, 1]} : vector<7x4x128xf32> to vector<5x1x128xf32>
    %61 = vector.shape_cast %60 : vector<5x1x128xf32> to vector<5x128xf32>
    %c40 = arith.constant 40 : index
    %c0_15 = arith.constant 0 : index
    %62 = vector.load %arg1[%c40, %c0_15] : memref<552x128xf32, #tpu.memory_space<vmem>>, vector<8x128xf32>
    %63 = vector.shape_cast %61 : vector<5x128xf32> to vector<5x1x128xf32>
    %64 = vector.shape_cast %62 : vector<8x128xf32> to vector<1x8x128xf32>
    %65 = vector.broadcast %63 : vector<5x1x128xf32> to vector<5x8x128xf32>
    %66 = vector.broadcast %64 : vector<1x8x128xf32> to vector<5x8x128xf32>
    %67 = arith.mulf %65, %66 : vector<5x8x128xf32>
    %68 = arith.addf %59, %67 : vector<5x8x128xf32>
    %69 = vector.extract_strided_slice %40 {offsets = [0, 3, 0], sizes = [5, 1, 128], strides = [1, 1, 1]} : vector<7x4x128xf32> to vector<5x1x128xf32>
    %70 = vector.shape_cast %69 : vector<5x1x128xf32> to vector<5x128xf32>
    %c48 = arith.constant 48 : index
    %c0_16 = arith.constant 0 : index
    %71 = vector.load %arg1[%c48, %c0_16] : memref<552x128xf32, #tpu.memory_space<vmem>>, vector<8x128xf32>
    %72 = vector.shape_cast %70 : vector<5x128xf32> to vector<5x1x128xf32>
    %73 = vector.shape_cast %71 : vector<8x128xf32> to vector<1x8x128xf32>
    %74 = vector.broadcast %72 : vector<5x1x128xf32> to vector<5x8x128xf32>
    %75 = vector.broadcast %73 : vector<1x8x128xf32> to vector<5x8x128xf32>
    %76 = arith.mulf %74, %75 : vector<5x8x128xf32>
    %77 = arith.addf %68, %76 : vector<5x8x128xf32>
    %78 = vector.extract_strided_slice %40 {offsets = [1, 0, 0], sizes = [5, 1, 128], strides = [1, 1, 1]} : vector<7x4x128xf32> to vector<5x1x128xf32>
    %79 = vector.shape_cast %78 : vector<5x1x128xf32> to vector<5x128xf32>
    %c56 = arith.constant 56 : index
    %c0_17 = arith.constant 0 : index
    %80 = vector.load %arg1[%c56, %c0_17] : memref<552x128xf32, #tpu.memory_space<vmem>>, vector<8x128xf32>
    %81 = vector.shape_cast %79 : vector<5x128xf32> to vector<5x1x128xf32>
    %82 = vector.shape_cast %80 : vector<8x128xf32> to vector<1x8x128xf32>
    %83 = vector.broadcast %81 : vector<5x1x128xf32> to vector<5x8x128xf32>
    %84 = vector.broadcast %82 : vector<1x8x128xf32> to vector<5x8x128xf32>
    %85 = arith.mulf %83, %84 : vector<5x8x128xf32>
    %86 = arith.addf %77, %85 : vector<5x8x128xf32>
    %87 = vector.extract_strided_slice %40 {offsets = [1, 1, 0], sizes = [5, 1, 128], strides = [1, 1, 1]} : vector<7x4x128xf32> to vector<5x1x128xf32>
    %88 = vector.shape_cast %87 : vector<5x1x128xf32> to vector<5x128xf32>
    %c64 = arith.constant 64 : index
    %c0_18 = arith.constant 0 : index
    %89 = vector.load %arg1[%c64, %c0_18] : memref<552x128xf32, #tpu.memory_space<vmem>>, vector<8x128xf32>
    %90 = vector.shape_cast %88 : vector<5x128xf32> to vector<5x1x128xf32>
    %91 = vector.shape_cast %89 : vector<8x128xf32> to vector<1x8x128xf32>
    %92 = vector.broadcast %90 : vector<5x1x128xf32> to vector<5x8x128xf32>
    %93 = vector.broadcast %91 : vector<1x8x128xf32> to vector<5x8x128xf32>
    %94 = arith.mulf %92, %93 : vector<5x8x128xf32>
    %95 = arith.addf %86, %94 : vector<5x8x128xf32>
    %96 = vector.extract_strided_slice %40 {offsets = [1, 2, 0], sizes = [5, 1, 128], strides = [1, 1, 1]} : vector<7x4x128xf32> to vector<5x1x128xf32>
    %97 = vector.shape_cast %96 : vector<5x1x128xf32> to vector<5x128xf32>
    %c72 = arith.constant 72 : index
    %c0_19 = arith.constant 0 : index
    %98 = vector.load %arg1[%c72, %c0_19] : memref<552x128xf32, #tpu.memory_space<vmem>>, vector<8x128xf32>
    %99 = vector.shape_cast %97 : vector<5x128xf32> to vector<5x1x128xf32>
    %100 = vector.shape_cast %98 : vector<8x128xf32> to vector<1x8x128xf32>
    %101 = vector.broadcast %99 : vector<5x1x128xf32> to vector<5x8x128xf32>
    %102 = vector.broadcast %100 : vector<1x8x128xf32> to vector<5x8x128xf32>
    %103 = arith.mulf %101, %102 : vector<5x8x128xf32>
    %104 = arith.addf %95, %103 : vector<5x8x128xf32>
    %105 = vector.extract_strided_slice %40 {offsets = [1, 3, 0], sizes = [5, 1, 128], strides = [1, 1, 1]} : vector<7x4x128xf32> to vector<5x1x128xf32>
    %106 = vector.shape_cast %105 : vector<5x1x128xf32> to vector<5x128xf32>
    %c80 = arith.constant 80 : index
    %c0_20 = arith.constant 0 : index
    %107 = vector.load %arg1[%c80, %c0_20] : memref<552x128xf32, #tpu.memory_space<vmem>>, vector<8x128xf32>
    %108 = vector.shape_cast %106 : vector<5x128xf32> to vector<5x1x128xf32>
    %109 = vector.shape_cast %107 : vector<8x128xf32> to vector<1x8x128xf32>
    %110 = vector.broadcast %108 : vector<5x1x128xf32> to vector<5x8x128xf32>
    %111 = vector.broadcast %109 : vector<1x8x128xf32> to vector<5x8x128xf32>
    %112 = arith.mulf %110, %111 : vector<5x8x128xf32>
    %113 = arith.addf %104, %112 : vector<5x8x128xf32>
    %114 = vector.extract_strided_slice %40 {offsets = [2, 0, 0], sizes = [5, 1, 128], strides = [1, 1, 1]} : vector<7x4x128xf32> to vector<5x1x128xf32>
    %115 = vector.shape_cast %114 : vector<5x1x128xf32> to vector<5x128xf32>
    %c88 = arith.constant 88 : index
    %c0_21 = arith.constant 0 : index
    %116 = vector.load %arg1[%c88, %c0_21] : memref<552x128xf32, #tpu.memory_space<vmem>>, vector<8x128xf32>
    %117 = vector.shape_cast %115 : vector<5x128xf32> to vector<5x1x128xf32>
    %118 = vector.shape_cast %116 : vector<8x128xf32> to vector<1x8x128xf32>
    %119 = vector.broadcast %117 : vector<5x1x128xf32> to vector<5x8x128xf32>
    %120 = vector.broadcast %118 : vector<1x8x128xf32> to vector<5x8x128xf32>
    %121 = arith.mulf %119, %120 : vector<5x8x128xf32>
    %122 = arith.addf %113, %121 : vector<5x8x128xf32>
    %123 = vector.extract_strided_slice %40 {offsets = [2, 1, 0], sizes = [5, 1, 128], strides = [1, 1, 1]} : vector<7x4x128xf32> to vector<5x1x128xf32>
    %124 = vector.shape_cast %123 : vector<5x1x128xf32> to vector<5x128xf32>
    %c96 = arith.constant 96 : index
    %c0_22 = arith.constant 0 : index
    %125 = vector.load %arg1[%c96, %c0_22] : memref<552x128xf32, #tpu.memory_space<vmem>>, vector<8x128xf32>
    %126 = vector.shape_cast %124 : vector<5x128xf32> to vector<5x1x128xf32>
    %127 = vector.shape_cast %125 : vector<8x128xf32> to vector<1x8x128xf32>
    %128 = vector.broadcast %126 : vector<5x1x128xf32> to vector<5x8x128xf32>
    %129 = vector.broadcast %127 : vector<1x8x128xf32> to vector<5x8x128xf32>
    %130 = arith.mulf %128, %129 : vector<5x8x128xf32>
    %131 = arith.addf %122, %130 : vector<5x8x128xf32>
    %132 = vector.extract_strided_slice %40 {offsets = [2, 2, 0], sizes = [5, 1, 128], strides = [1, 1, 1]} : vector<7x4x128xf32> to vector<5x1x128xf32>
    %133 = vector.shape_cast %132 : vector<5x1x128xf32> to vector<5x128xf32>
    %c104 = arith.constant 104 : index
    %c0_23 = arith.constant 0 : index
    %134 = vector.load %arg1[%c104, %c0_23] : memref<552x128xf32, #tpu.memory_space<vmem>>, vector<8x128xf32>
    %135 = vector.shape_cast %133 : vector<5x128xf32> to vector<5x1x128xf32>
    %136 = vector.shape_cast %134 : vector<8x128xf32> to vector<1x8x128xf32>
    %137 = vector.broadcast %135 : vector<5x1x128xf32> to vector<5x8x128xf32>
    %138 = vector.broadcast %136 : vector<1x8x128xf32> to vector<5x8x128xf32>
    %139 = arith.mulf %137, %138 : vector<5x8x128xf32>
    %140 = arith.addf %131, %139 : vector<5x8x128xf32>
    %141 = vector.extract_strided_slice %40 {offsets = [2, 3, 0], sizes = [5, 1, 128], strides = [1, 1, 1]} : vector<7x4x128xf32> to vector<5x1x128xf32>
    %142 = vector.shape_cast %141 : vector<5x1x128xf32> to vector<5x128xf32>
    %c112 = arith.constant 112 : index
    %c0_24 = arith.constant 0 : index
    %143 = vector.load %arg1[%c112, %c0_24] : memref<552x128xf32, #tpu.memory_space<vmem>>, vector<8x128xf32>
    %144 = vector.shape_cast %142 : vector<5x128xf32> to vector<5x1x128xf32>
    %145 = vector.shape_cast %143 : vector<8x128xf32> to vector<1x8x128xf32>
    %146 = vector.broadcast %144 : vector<5x1x128xf32> to vector<5x8x128xf32>
    %147 = vector.broadcast %145 : vector<1x8x128xf32> to vector<5x8x128xf32>
    %148 = arith.mulf %146, %147 : vector<5x8x128xf32>
    %149 = arith.addf %140, %148 : vector<5x8x128xf32>
    %c120 = arith.constant 120 : index
    %c0_25 = arith.constant 0 : index
    %150 = vector.load %arg1[%c120, %c0_25] : memref<552x128xf32, #tpu.memory_space<vmem>>, vector<8x128xf32>
    %151 = vector.shape_cast %150 : vector<8x128xf32> to vector<1x8x128xf32>
    %152 = vector.broadcast %151 : vector<1x8x128xf32> to vector<5x8x128xf32>
    %153 = arith.addf %149, %152 : vector<5x8x128xf32>
    %cst_26 = arith.constant 0.000000e+00 : f32
    %154 = vector.broadcast %cst_26 : f32 to vector<5x8x128xf32>
    %155 = arith.cmpf ogt, %153, %154 : vector<5x8x128xf32>
    %cst_27 = arith.constant 5.000000e-02 : f32
    %156 = vector.broadcast %cst_27 : f32 to vector<5x8x128xf32>
    %157 = arith.mulf %156, %153 : vector<5x8x128xf32>
    %158 = arith.select %155, %153, %157 : vector<5x8x128xi1>, vector<5x8x128xf32>
    %159 = vector.extract_strided_slice %158 {offsets = [0, 0, 0], sizes = [4, 8, 128], strides = [1, 1, 1]} : vector<5x8x128xf32> to vector<4x8x128xf32>
    %160 = vector.shape_cast %159 : vector<4x8x128xf32> to vector<2x2x8x128xf32>
    %cst_28 = arith.constant dense<0xFF800000> : vector<2x8x128xf32>
    %161 = vector.multi_reduction <maximumf>, %160, %cst_28 [1] : vector<2x2x8x128xf32> to vector<2x8x128xf32>
    %c384 = arith.constant 384 : index
    %c0_29 = arith.constant 0 : index
    %162 = vector.load %arg1[%c384, %c0_29] : memref<552x128xf32, #tpu.memory_space<vmem>>, vector<16x128xf32>
    %163 = vector.extract_strided_slice %161 {offsets = [0, 0, 0], sizes = [1, 1, 128], strides = [1, 1, 1]} : vector<2x8x128xf32> to vector<1x1x128xf32>
    %164 = vector.shape_cast %163 : vector<1x1x128xf32> to vector<1x128xf32>
    %c128 = arith.constant 128 : index
    %c0_30 = arith.constant 0 : index
    %165 = vector.load %arg1[%c128, %c0_30] : memref<552x128xf32, #tpu.memory_space<vmem>>, vector<16x128xf32>
    %166 = vector.broadcast %164 : vector<1x128xf32> to vector<16x128xf32>
    %167 = arith.mulf %166, %165 : vector<16x128xf32>
    %168 = arith.addf %162, %167 : vector<16x128xf32>
    %169 = vector.extract_strided_slice %161 {offsets = [1, 0, 0], sizes = [1, 1, 128], strides = [1, 1, 1]} : vector<2x8x128xf32> to vector<1x1x128xf32>
    %170 = vector.shape_cast %169 : vector<1x1x128xf32> to vector<1x128xf32>
    %c144 = arith.constant 144 : index
    %c0_31 = arith.constant 0 : index
    %171 = vector.load %arg1[%c144, %c0_31] : memref<552x128xf32, #tpu.memory_space<vmem>>, vector<16x128xf32>
    %172 = vector.broadcast %170 : vector<1x128xf32> to vector<16x128xf32>
    %173 = arith.mulf %172, %171 : vector<16x128xf32>
    %174 = arith.addf %168, %173 : vector<16x128xf32>
    %175 = vector.extract_strided_slice %161 {offsets = [0, 1, 0], sizes = [1, 1, 128], strides = [1, 1, 1]} : vector<2x8x128xf32> to vector<1x1x128xf32>
    %176 = vector.shape_cast %175 : vector<1x1x128xf32> to vector<1x128xf32>
    %c160 = arith.constant 160 : index
    %c0_32 = arith.constant 0 : index
    %177 = vector.load %arg1[%c160, %c0_32] : memref<552x128xf32, #tpu.memory_space<vmem>>, vector<16x128xf32>
    %178 = vector.broadcast %176 : vector<1x128xf32> to vector<16x128xf32>
    %179 = arith.mulf %178, %177 : vector<16x128xf32>
    %180 = arith.addf %174, %179 : vector<16x128xf32>
    %181 = vector.extract_strided_slice %161 {offsets = [1, 1, 0], sizes = [1, 1, 128], strides = [1, 1, 1]} : vector<2x8x128xf32> to vector<1x1x128xf32>
    %182 = vector.shape_cast %181 : vector<1x1x128xf32> to vector<1x128xf32>
    %c176 = arith.constant 176 : index
    %c0_33 = arith.constant 0 : index
    %183 = vector.load %arg1[%c176, %c0_33] : memref<552x128xf32, #tpu.memory_space<vmem>>, vector<16x128xf32>
    %184 = vector.broadcast %182 : vector<1x128xf32> to vector<16x128xf32>
    %185 = arith.mulf %184, %183 : vector<16x128xf32>
    %186 = arith.addf %180, %185 : vector<16x128xf32>
    %187 = vector.extract_strided_slice %161 {offsets = [0, 2, 0], sizes = [1, 1, 128], strides = [1, 1, 1]} : vector<2x8x128xf32> to vector<1x1x128xf32>
    %188 = vector.shape_cast %187 : vector<1x1x128xf32> to vector<1x128xf32>
    %c192 = arith.constant 192 : index
    %c0_34 = arith.constant 0 : index
    %189 = vector.load %arg1[%c192, %c0_34] : memref<552x128xf32, #tpu.memory_space<vmem>>, vector<16x128xf32>
    %190 = vector.broadcast %188 : vector<1x128xf32> to vector<16x128xf32>
    %191 = arith.mulf %190, %189 : vector<16x128xf32>
    %192 = arith.addf %186, %191 : vector<16x128xf32>
    %193 = vector.extract_strided_slice %161 {offsets = [1, 2, 0], sizes = [1, 1, 128], strides = [1, 1, 1]} : vector<2x8x128xf32> to vector<1x1x128xf32>
    %194 = vector.shape_cast %193 : vector<1x1x128xf32> to vector<1x128xf32>
    %c208 = arith.constant 208 : index
    %c0_35 = arith.constant 0 : index
    %195 = vector.load %arg1[%c208, %c0_35] : memref<552x128xf32, #tpu.memory_space<vmem>>, vector<16x128xf32>
    %196 = vector.broadcast %194 : vector<1x128xf32> to vector<16x128xf32>
    %197 = arith.mulf %196, %195 : vector<16x128xf32>
    %198 = arith.addf %192, %197 : vector<16x128xf32>
    %199 = vector.extract_strided_slice %161 {offsets = [0, 3, 0], sizes = [1, 1, 128], strides = [1, 1, 1]} : vector<2x8x128xf32> to vector<1x1x128xf32>
    %200 = vector.shape_cast %199 : vector<1x1x128xf32> to vector<1x128xf32>
    %c224 = arith.constant 224 : index
    %c0_36 = arith.constant 0 : index
    %201 = vector.load %arg1[%c224, %c0_36] : memref<552x128xf32, #tpu.memory_space<vmem>>, vector<16x128xf32>
    %202 = vector.broadcast %200 : vector<1x128xf32> to vector<16x128xf32>
    %203 = arith.mulf %202, %201 : vector<16x128xf32>
    %204 = arith.addf %198, %203 : vector<16x128xf32>
    %205 = vector.extract_strided_slice %161 {offsets = [1, 3, 0], sizes = [1, 1, 128], strides = [1, 1, 1]} : vector<2x8x128xf32> to vector<1x1x128xf32>
    %206 = vector.shape_cast %205 : vector<1x1x128xf32> to vector<1x128xf32>
    %c240 = arith.constant 240 : index
    %c0_37 = arith.constant 0 : index
    %207 = vector.load %arg1[%c240, %c0_37] : memref<552x128xf32, #tpu.memory_space<vmem>>, vector<16x128xf32>
    %208 = vector.broadcast %206 : vector<1x128xf32> to vector<16x128xf32>
    %209 = arith.mulf %208, %207 : vector<16x128xf32>
    %210 = arith.addf %204, %209 : vector<16x128xf32>
    %211 = vector.extract_strided_slice %161 {offsets = [0, 4, 0], sizes = [1, 1, 128], strides = [1, 1, 1]} : vector<2x8x128xf32> to vector<1x1x128xf32>
    %212 = vector.shape_cast %211 : vector<1x1x128xf32> to vector<1x128xf32>
    %c256 = arith.constant 256 : index
    %c0_38 = arith.constant 0 : index
    %213 = vector.load %arg1[%c256, %c0_38] : memref<552x128xf32, #tpu.memory_space<vmem>>, vector<16x128xf32>
    %214 = vector.broadcast %212 : vector<1x128xf32> to vector<16x128xf32>
    %215 = arith.mulf %214, %213 : vector<16x128xf32>
    %216 = arith.addf %210, %215 : vector<16x128xf32>
    %217 = vector.extract_strided_slice %161 {offsets = [1, 4, 0], sizes = [1, 1, 128], strides = [1, 1, 1]} : vector<2x8x128xf32> to vector<1x1x128xf32>
    %218 = vector.shape_cast %217 : vector<1x1x128xf32> to vector<1x128xf32>
    %c272 = arith.constant 272 : index
    %c0_39 = arith.constant 0 : index
    %219 = vector.load %arg1[%c272, %c0_39] : memref<552x128xf32, #tpu.memory_space<vmem>>, vector<16x128xf32>
    %220 = vector.broadcast %218 : vector<1x128xf32> to vector<16x128xf32>
    %221 = arith.mulf %220, %219 : vector<16x128xf32>
    %222 = arith.addf %216, %221 : vector<16x128xf32>
    %223 = vector.extract_strided_slice %161 {offsets = [0, 5, 0], sizes = [1, 1, 128], strides = [1, 1, 1]} : vector<2x8x128xf32> to vector<1x1x128xf32>
    %224 = vector.shape_cast %223 : vector<1x1x128xf32> to vector<1x128xf32>
    %c288 = arith.constant 288 : index
    %c0_40 = arith.constant 0 : index
    %225 = vector.load %arg1[%c288, %c0_40] : memref<552x128xf32, #tpu.memory_space<vmem>>, vector<16x128xf32>
    %226 = vector.broadcast %224 : vector<1x128xf32> to vector<16x128xf32>
    %227 = arith.mulf %226, %225 : vector<16x128xf32>
    %228 = arith.addf %222, %227 : vector<16x128xf32>
    %229 = vector.extract_strided_slice %161 {offsets = [1, 5, 0], sizes = [1, 1, 128], strides = [1, 1, 1]} : vector<2x8x128xf32> to vector<1x1x128xf32>
    %230 = vector.shape_cast %229 : vector<1x1x128xf32> to vector<1x128xf32>
    %c304 = arith.constant 304 : index
    %c0_41 = arith.constant 0 : index
    %231 = vector.load %arg1[%c304, %c0_41] : memref<552x128xf32, #tpu.memory_space<vmem>>, vector<16x128xf32>
    %232 = vector.broadcast %230 : vector<1x128xf32> to vector<16x128xf32>
    %233 = arith.mulf %232, %231 : vector<16x128xf32>
    %234 = arith.addf %228, %233 : vector<16x128xf32>
    %235 = vector.extract_strided_slice %161 {offsets = [0, 6, 0], sizes = [1, 1, 128], strides = [1, 1, 1]} : vector<2x8x128xf32> to vector<1x1x128xf32>
    %236 = vector.shape_cast %235 : vector<1x1x128xf32> to vector<1x128xf32>
    %c320 = arith.constant 320 : index
    %c0_42 = arith.constant 0 : index
    %237 = vector.load %arg1[%c320, %c0_42] : memref<552x128xf32, #tpu.memory_space<vmem>>, vector<16x128xf32>
    %238 = vector.broadcast %236 : vector<1x128xf32> to vector<16x128xf32>
    %239 = arith.mulf %238, %237 : vector<16x128xf32>
    %240 = arith.addf %234, %239 : vector<16x128xf32>
    %241 = vector.extract_strided_slice %161 {offsets = [1, 6, 0], sizes = [1, 1, 128], strides = [1, 1, 1]} : vector<2x8x128xf32> to vector<1x1x128xf32>
    %242 = vector.shape_cast %241 : vector<1x1x128xf32> to vector<1x128xf32>
    %c336 = arith.constant 336 : index
    %c0_43 = arith.constant 0 : index
    %243 = vector.load %arg1[%c336, %c0_43] : memref<552x128xf32, #tpu.memory_space<vmem>>, vector<16x128xf32>
    %244 = vector.broadcast %242 : vector<1x128xf32> to vector<16x128xf32>
    %245 = arith.mulf %244, %243 : vector<16x128xf32>
    %246 = arith.addf %240, %245 : vector<16x128xf32>
    %247 = vector.extract_strided_slice %161 {offsets = [0, 7, 0], sizes = [1, 1, 128], strides = [1, 1, 1]} : vector<2x8x128xf32> to vector<1x1x128xf32>
    %248 = vector.shape_cast %247 : vector<1x1x128xf32> to vector<1x128xf32>
    %c352 = arith.constant 352 : index
    %c0_44 = arith.constant 0 : index
    %249 = vector.load %arg1[%c352, %c0_44] : memref<552x128xf32, #tpu.memory_space<vmem>>, vector<16x128xf32>
    %250 = vector.broadcast %248 : vector<1x128xf32> to vector<16x128xf32>
    %251 = arith.mulf %250, %249 : vector<16x128xf32>
    %252 = arith.addf %246, %251 : vector<16x128xf32>
    %253 = vector.extract_strided_slice %161 {offsets = [1, 7, 0], sizes = [1, 1, 128], strides = [1, 1, 1]} : vector<2x8x128xf32> to vector<1x1x128xf32>
    %254 = vector.shape_cast %253 : vector<1x1x128xf32> to vector<1x128xf32>
    %c368 = arith.constant 368 : index
    %c0_45 = arith.constant 0 : index
    %255 = vector.load %arg1[%c368, %c0_45] : memref<552x128xf32, #tpu.memory_space<vmem>>, vector<16x128xf32>
    %256 = vector.broadcast %254 : vector<1x128xf32> to vector<16x128xf32>
    %257 = arith.mulf %256, %255 : vector<16x128xf32>
    %258 = arith.addf %252, %257 : vector<16x128xf32>
    %c528 = arith.constant 528 : index
    %c0_46 = arith.constant 0 : index
    %259 = vector.load %arg1[%c528, %c0_46] : memref<552x128xf32, #tpu.memory_space<vmem>>, vector<8x128xf32>
    %260 = vector.extract_strided_slice %258 {offsets = [0, 0], sizes = [1, 128], strides = [1, 1]} : vector<16x128xf32> to vector<1x128xf32>
    %c400 = arith.constant 400 : index
    %c0_47 = arith.constant 0 : index
    %261 = vector.load %arg1[%c400, %c0_47] : memref<552x128xf32, #tpu.memory_space<vmem>>, vector<8x128xf32>
    %262 = vector.broadcast %260 : vector<1x128xf32> to vector<8x128xf32>
    %263 = arith.mulf %262, %261 : vector<8x128xf32>
    %264 = arith.addf %259, %263 : vector<8x128xf32>
    %265 = vector.extract_strided_slice %258 {offsets = [1, 0], sizes = [1, 128], strides = [1, 1]} : vector<16x128xf32> to vector<1x128xf32>
    %c408 = arith.constant 408 : index
    %c0_48 = arith.constant 0 : index
    %266 = vector.load %arg1[%c408, %c0_48] : memref<552x128xf32, #tpu.memory_space<vmem>>, vector<8x128xf32>
    %267 = vector.broadcast %265 : vector<1x128xf32> to vector<8x128xf32>
    %268 = arith.mulf %267, %266 : vector<8x128xf32>
    %269 = arith.addf %264, %268 : vector<8x128xf32>
    %270 = vector.extract_strided_slice %258 {offsets = [2, 0], sizes = [1, 128], strides = [1, 1]} : vector<16x128xf32> to vector<1x128xf32>
    %c416 = arith.constant 416 : index
    %c0_49 = arith.constant 0 : index
    %271 = vector.load %arg1[%c416, %c0_49] : memref<552x128xf32, #tpu.memory_space<vmem>>, vector<8x128xf32>
    %272 = vector.broadcast %270 : vector<1x128xf32> to vector<8x128xf32>
    %273 = arith.mulf %272, %271 : vector<8x128xf32>
    %274 = arith.addf %269, %273 : vector<8x128xf32>
    %275 = vector.extract_strided_slice %258 {offsets = [3, 0], sizes = [1, 128], strides = [1, 1]} : vector<16x128xf32> to vector<1x128xf32>
    %c424 = arith.constant 424 : index
    %c0_50 = arith.constant 0 : index
    %276 = vector.load %arg1[%c424, %c0_50] : memref<552x128xf32, #tpu.memory_space<vmem>>, vector<8x128xf32>
    %277 = vector.broadcast %275 : vector<1x128xf32> to vector<8x128xf32>
    %278 = arith.mulf %277, %276 : vector<8x128xf32>
    %279 = arith.addf %274, %278 : vector<8x128xf32>
    %280 = vector.extract_strided_slice %258 {offsets = [4, 0], sizes = [1, 128], strides = [1, 1]} : vector<16x128xf32> to vector<1x128xf32>
    %c432 = arith.constant 432 : index
    %c0_51 = arith.constant 0 : index
    %281 = vector.load %arg1[%c432, %c0_51] : memref<552x128xf32, #tpu.memory_space<vmem>>, vector<8x128xf32>
    %282 = vector.broadcast %280 : vector<1x128xf32> to vector<8x128xf32>
    %283 = arith.mulf %282, %281 : vector<8x128xf32>
    %284 = arith.addf %279, %283 : vector<8x128xf32>
    %285 = vector.extract_strided_slice %258 {offsets = [5, 0], sizes = [1, 128], strides = [1, 1]} : vector<16x128xf32> to vector<1x128xf32>
    %c440 = arith.constant 440 : index
    %c0_52 = arith.constant 0 : index
    %286 = vector.load %arg1[%c440, %c0_52] : memref<552x128xf32, #tpu.memory_space<vmem>>, vector<8x128xf32>
    %287 = vector.broadcast %285 : vector<1x128xf32> to vector<8x128xf32>
    %288 = arith.mulf %287, %286 : vector<8x128xf32>
    %289 = arith.addf %284, %288 : vector<8x128xf32>
    %290 = vector.extract_strided_slice %258 {offsets = [6, 0], sizes = [1, 128], strides = [1, 1]} : vector<16x128xf32> to vector<1x128xf32>
    %c448 = arith.constant 448 : index
    %c0_53 = arith.constant 0 : index
    %291 = vector.load %arg1[%c448, %c0_53] : memref<552x128xf32, #tpu.memory_space<vmem>>, vector<8x128xf32>
    %292 = vector.broadcast %290 : vector<1x128xf32> to vector<8x128xf32>
    %293 = arith.mulf %292, %291 : vector<8x128xf32>
    %294 = arith.addf %289, %293 : vector<8x128xf32>
    %295 = vector.extract_strided_slice %258 {offsets = [7, 0], sizes = [1, 128], strides = [1, 1]} : vector<16x128xf32> to vector<1x128xf32>
    %c456 = arith.constant 456 : index
    %c0_54 = arith.constant 0 : index
    %296 = vector.load %arg1[%c456, %c0_54] : memref<552x128xf32, #tpu.memory_space<vmem>>, vector<8x128xf32>
    %297 = vector.broadcast %295 : vector<1x128xf32> to vector<8x128xf32>
    %298 = arith.mulf %297, %296 : vector<8x128xf32>
    %299 = arith.addf %294, %298 : vector<8x128xf32>
    %300 = vector.extract_strided_slice %258 {offsets = [8, 0], sizes = [1, 128], strides = [1, 1]} : vector<16x128xf32> to vector<1x128xf32>
    %c464 = arith.constant 464 : index
    %c0_55 = arith.constant 0 : index
    %301 = vector.load %arg1[%c464, %c0_55] : memref<552x128xf32, #tpu.memory_space<vmem>>, vector<8x128xf32>
    %302 = vector.broadcast %300 : vector<1x128xf32> to vector<8x128xf32>
    %303 = arith.mulf %302, %301 : vector<8x128xf32>
    %304 = arith.addf %299, %303 : vector<8x128xf32>
    %305 = vector.extract_strided_slice %258 {offsets = [9, 0], sizes = [1, 128], strides = [1, 1]} : vector<16x128xf32> to vector<1x128xf32>
    %c472 = arith.constant 472 : index
    %c0_56 = arith.constant 0 : index
    %306 = vector.load %arg1[%c472, %c0_56] : memref<552x128xf32, #tpu.memory_space<vmem>>, vector<8x128xf32>
    %307 = vector.broadcast %305 : vector<1x128xf32> to vector<8x128xf32>
    %308 = arith.mulf %307, %306 : vector<8x128xf32>
    %309 = arith.addf %304, %308 : vector<8x128xf32>
    %310 = vector.extract_strided_slice %258 {offsets = [10, 0], sizes = [1, 128], strides = [1, 1]} : vector<16x128xf32> to vector<1x128xf32>
    %c480 = arith.constant 480 : index
    %c0_57 = arith.constant 0 : index
    %311 = vector.load %arg1[%c480, %c0_57] : memref<552x128xf32, #tpu.memory_space<vmem>>, vector<8x128xf32>
    %312 = vector.broadcast %310 : vector<1x128xf32> to vector<8x128xf32>
    %313 = arith.mulf %312, %311 : vector<8x128xf32>
    %314 = arith.addf %309, %313 : vector<8x128xf32>
    %315 = vector.extract_strided_slice %258 {offsets = [11, 0], sizes = [1, 128], strides = [1, 1]} : vector<16x128xf32> to vector<1x128xf32>
    %c488 = arith.constant 488 : index
    %c0_58 = arith.constant 0 : index
    %316 = vector.load %arg1[%c488, %c0_58] : memref<552x128xf32, #tpu.memory_space<vmem>>, vector<8x128xf32>
    %317 = vector.broadcast %315 : vector<1x128xf32> to vector<8x128xf32>
    %318 = arith.mulf %317, %316 : vector<8x128xf32>
    %319 = arith.addf %314, %318 : vector<8x128xf32>
    %320 = vector.extract_strided_slice %258 {offsets = [12, 0], sizes = [1, 128], strides = [1, 1]} : vector<16x128xf32> to vector<1x128xf32>
    %c496 = arith.constant 496 : index
    %c0_59 = arith.constant 0 : index
    %321 = vector.load %arg1[%c496, %c0_59] : memref<552x128xf32, #tpu.memory_space<vmem>>, vector<8x128xf32>
    %322 = vector.broadcast %320 : vector<1x128xf32> to vector<8x128xf32>
    %323 = arith.mulf %322, %321 : vector<8x128xf32>
    %324 = arith.addf %319, %323 : vector<8x128xf32>
    %325 = vector.extract_strided_slice %258 {offsets = [13, 0], sizes = [1, 128], strides = [1, 1]} : vector<16x128xf32> to vector<1x128xf32>
    %c504 = arith.constant 504 : index
    %c0_60 = arith.constant 0 : index
    %326 = vector.load %arg1[%c504, %c0_60] : memref<552x128xf32, #tpu.memory_space<vmem>>, vector<8x128xf32>
    %327 = vector.broadcast %325 : vector<1x128xf32> to vector<8x128xf32>
    %328 = arith.mulf %327, %326 : vector<8x128xf32>
    %329 = arith.addf %324, %328 : vector<8x128xf32>
    %330 = vector.extract_strided_slice %258 {offsets = [14, 0], sizes = [1, 128], strides = [1, 1]} : vector<16x128xf32> to vector<1x128xf32>
    %c512 = arith.constant 512 : index
    %c0_61 = arith.constant 0 : index
    %331 = vector.load %arg1[%c512, %c0_61] : memref<552x128xf32, #tpu.memory_space<vmem>>, vector<8x128xf32>
    %332 = vector.broadcast %330 : vector<1x128xf32> to vector<8x128xf32>
    %333 = arith.mulf %332, %331 : vector<8x128xf32>
    %334 = arith.addf %329, %333 : vector<8x128xf32>
    %335 = vector.extract_strided_slice %258 {offsets = [15, 0], sizes = [1, 128], strides = [1, 1]} : vector<16x128xf32> to vector<1x128xf32>
    %c520 = arith.constant 520 : index
    %c0_62 = arith.constant 0 : index
    %336 = vector.load %arg1[%c520, %c0_62] : memref<552x128xf32, #tpu.memory_space<vmem>>, vector<8x128xf32>
    %337 = vector.broadcast %335 : vector<1x128xf32> to vector<8x128xf32>
    %338 = arith.mulf %337, %336 : vector<8x128xf32>
    %339 = arith.addf %334, %338 : vector<8x128xf32>
    %c536 = arith.constant 536 : index
    %c0_63 = arith.constant 0 : index
    %340 = vector.load %arg1[%c536, %c0_63] : memref<552x128xf32, #tpu.memory_space<vmem>>, vector<8x128xf32>
    %341 = arith.mulf %339, %340 : vector<8x128xf32>
    %cst_64 = arith.constant dense<0.000000e+00> : vector<128xf32>
    %342 = vector.multi_reduction <add>, %341, %cst_64 [0] : vector<8x128xf32> to vector<128xf32>
    %343 = vector.shape_cast %342 : vector<128xf32> to vector<1x128xf32>
    %c544 = arith.constant 544 : index
    %c0_65 = arith.constant 0 : index
    %344 = vector.load %arg1[%c544, %c0_65] : memref<552x128xf32, #tpu.memory_space<vmem>>, vector<1x128xf32>
    %345 = arith.addf %343, %344 : vector<1x128xf32>
    %c0_66 = arith.constant 0 : index
    %c0_67 = arith.constant 0 : index
    %346 = vector.load %arg2[%c0_66, %c0_67] : memref<32x128xf32, #tpu.memory_space<vmem>>, vector<32x128xf32>
    %347 = vector.extract_strided_slice %346 {offsets = [0, 0], sizes = [32, 64], strides = [1, 1]} : vector<32x128xf32> to vector<32x64xf32>
    %348 = vector.extract_strided_slice %346 {offsets = [0, 64], sizes = [32, 1], strides = [1, 1]} : vector<32x128xf32> to vector<32x1xf32>
    %349 = vector.extract_strided_slice %346 {offsets = [0, 65], sizes = [32, 1], strides = [1, 1]} : vector<32x128xf32> to vector<32x1xf32>
    %350 = vector.extract_strided_slice %346 {offsets = [0, 66], sizes = [1, 1], strides = [1, 1]} : vector<32x128xf32> to vector<1x1xf32>
    %351 = vector.extract_strided_slice %345 {offsets = [0, 0], sizes = [1, 64], strides = [1, 1]} : vector<1x128xf32> to vector<1x64xf32>
    %352 = vector.broadcast %351 : vector<1x64xf32> to vector<32x64xf32>
    %353 = arith.mulf %352, %347 : vector<32x64xf32>
    %cst_68 = arith.constant dense<0.000000e+00> : vector<32xf32>
    %354 = vector.multi_reduction <add>, %353, %cst_68 [1] : vector<32x64xf32> to vector<32xf32>
    %355 = vector.shape_cast %354 : vector<32xf32> to vector<32x1xf32>
    %356 = arith.addf %355, %348 : vector<32x1xf32>
    %357 = arith.mulf %356, %349 : vector<32x1xf32>
    %cst_69 = arith.constant dense<0.000000e+00> : vector<1xf32>
    %358 = vector.multi_reduction <add>, %357, %cst_69 [0] : vector<32x1xf32> to vector<1xf32>
    %359 = vector.shape_cast %358 : vector<1xf32> to vector<1x1xf32>
    %360 = arith.addf %359, %350 : vector<1x1xf32>
    %361 = vector.extract_strided_slice %345 {offsets = [0, 64], sizes = [1, 64], strides = [1, 1]} : vector<1x128xf32> to vector<1x64xf32>
    %362 = vector.broadcast %361 : vector<1x64xf32> to vector<32x64xf32>
    %363 = arith.mulf %362, %347 : vector<32x64xf32>
    %cst_70 = arith.constant dense<0.000000e+00> : vector<32xf32>
    %364 = vector.multi_reduction <add>, %363, %cst_70 [1] : vector<32x64xf32> to vector<32xf32>
    %365 = vector.shape_cast %364 : vector<32xf32> to vector<32x1xf32>
    %366 = arith.addf %365, %348 : vector<32x1xf32>
    %367 = arith.mulf %366, %349 : vector<32x1xf32>
    %cst_71 = arith.constant dense<0.000000e+00> : vector<1xf32>
    %368 = vector.multi_reduction <add>, %367, %cst_71 [0] : vector<32x1xf32> to vector<1xf32>
    %369 = vector.shape_cast %368 : vector<1xf32> to vector<1x1xf32>
    %370 = arith.addf %369, %350 : vector<1x1xf32>
    %371 = tpu.concatenate %360, %370 in 0 : vector<1x1xf32>, vector<1x1xf32> -> vector<2x1xf32>
    %c0_72 = arith.constant 0 : index
    %c0_73 = arith.constant 0 : index
    %372 = vector.load %arg3[%c0_72, %c0_73] : memref<2x1xf32, #tpu.memory_space<vmem>>, vector<2x1xf32>
    tpu.vector_store %arg3[%c0_72, %c0_73], %371 {strides = array<i32>} : memref<2x1xf32, #tpu.memory_space<vmem>>, vector<2x1xf32>,
    return
  }
}

</mosaic_0001>

<bundles_post_ra>
// kernel: mts_cnn_forward.1
= control target key start
LH: loop header
LB: loop body
LE: loop exit
PB: predicated region body
PF: predicated region fallthrough
CT: control target
= control target key end

     0   :  { %8 = vsyncpa [#allocation3], 0  ;;  %s834_s15 = smov [#allocation2]   ;;  %s835_s17 = smov 128   ;;  %s1110_s0 = inlined_call_operand.vmem [shape: f32[2,16,64], index: 0, kind: input, shape index: {}]   ;;  %s1111_s1 = inlined_call_operand.hbm [shape: f32[552,128], index: 1, kind: input, shape index: {}]   ;;  %s1112_s2 = inlined_call_operand.vmem [shape: f32[32,128], index: 2, kind: input, shape index: {}]   ;;  %s1113_s3 = inlined_call_operand.vmem [shape: f32[2,1], index: 3, kind: output, shape index: {}]  }
   0x1   :  { %s15_s14 = sshll.u32 %s1111_s1, 4  ;;  %s17_s16 = sshll.u32 %s834_s15, 4  ;;  %s16_s14 = int_to_ptr.hbm [resolvable:$true] %s15_s14  ;;  %s18_s16 = int_to_ptr.vmem [resolvable:$true] %s17_s16 }
   0x2   :  { %s836_s18 = smov 8  }
   0x3   :  { %23 = dma.hbm_to_vmem [thread:$0]  %s16_s14, 8832, %s18_s16, [#allocation3], %s835_s17, %s835_s17, %s836_s18  }
   0x4   :  { %832 = dma.done.wait [#allocation3], 8832  }
   0x5   :  { %833 = vsyncadd [#allocation3], 4294958464  ;;  %v800_v0 = vld [vmem:[%s1110_s0 + $0x10] sm:$0xff]  ;;  %s837_s21 = smov 64   ;;  %v801_v1 = vld [vmem:[%s1110_s0 + $0x18] sm:$0xff]  ;;  %vm43_vm0 = vcmask 523264  }
   0x6   :  { %37 = vrot.lane.b32.xlu0 %v800_v0, %s837_s21  ;;  %v30_v2 = vld [vmem:[%s1110_s0] sm:$0xff]  ;;  %v31_v5 = vld [vmem:[%s1110_s0 + $0x8] sm:$0xff]  ;;  %vm296_vm5 = vcmask 1043456   ;;  %s839_s7 = smov 126  }
   0x7   :  { %v882_v25 = vld [vmem:[#allocation2] sm:$0xf]  ;;  %v884_v30 = vld [vmem:[#allocation2 + $0x4] sm:$0xf] }
   0xe   :  { %39 = vrot.lane.b32.xlu0 %v801_v1, %s837_s21 }
  0x78   :  { %v38_v3 = vpop.permute.xlu0 %37 }
  0x79   :  { %v44_v4 = vsel %vm43_vm0, %v30_v2, %v38_v3 }
  0x7a   :  { %108 = vst [vmem:[#allocation1] sm:$0xff] %v44_v4  ;;  %v49_v15 = vrot.slane %v44_v4, 1  ;;  %v50_v16 = vrot.slane %v44_v4, 2  ;;  %v51_v17 = vrot.slane %v44_v4, 3  ;;  %v52_v18 = vrot.slane %v44_v4, 4 }
  0x7b   :  { %v53_v19 = vrot.slane %v44_v4, 5  ;;  %v54_v20 = vrot.slane %v44_v4, 6  ;;  %v55_v21 = vrot.slane %v44_v4, 7  ;;  %v59_v22 = vperm.slane %v44_v4, 0 }
  0x7c   :  { %v60_v23 = vperm.slane %v49_v15, 0  ;;  %v61_v24 = vperm.slane %v50_v16, 0  ;;  %v62_v26 = vperm.slane %v51_v17, 0  ;;  %v63_v27 = vperm.slane %v52_v18, 0 }
  0x7d   :  { %v64_v28 = vperm.slane %v53_v19, 0  ;;  %v65_v29 = vperm.slane %v54_v20, 0  ;;  %v66_v31 = vperm.slane %v55_v21, 0  ;;  %v83_v38 = vmul.f32 %v59_v22, %v882_v25 }
  0x7e   :  { %v84_v39 = vmul.f32 %v60_v23, %v882_v25  ;;  %v85_v44 = vmul.f32 %v61_v24, %v882_v25  ;;  %v86_v45 = vmul.f32 %v62_v26, %v882_v25  ;;  %v87_v52 = vmul.f32 %v63_v27, %v882_v25 }
  0x7f   :  { %v88_v53 = vmul.f32 %v64_v28, %v882_v25  ;;  %v89_v54 = vmul.f32 %v65_v29, %v882_v25  ;;  %v90_v55 = vmul.f32 %v66_v31, %v882_v25 }
  0x80   :  { %v40_v6 = vpop.permute.xlu0 %39 }
  0x81   :  { %v110_v7 = vld [vmem:[#allocation1 + $0x1] ss:$9 sm:$0xff]  ;;  %v114_v9 = vld [vmem:[#allocation1 + $0x3] ss:$9 sm:$0xff]  ;;  %v879_v10 = vsel %vm43_vm0, %v31_v5, %v40_v6 }
  0x82   :  { %v112_v8 = vld [vmem:[#allocation1 + $0x2] ss:$9 sm:$0xff]  ;;  %v116_v11 = vld [vmem:[#allocation1 + $0x4] ss:$9 sm:$0xff]  ;;  %v129_v32 = vperm.slane %v110_v7, 0  ;;  %v131_v34 = vperm.slane %v114_v9, 0 }
  0x83   :  { %v118_v12 = vld [vmem:[#allocation1 + $0x5] ss:$9 sm:$0xff]  ;;  %v122_v14 = vld [vmem:[#allocation1 + $0x7] ss:$9 sm:$0xff]  ;;  %v130_v33 = vperm.slane %v112_v8, 0  ;;  %v132_v40 = vperm.slane %v116_v11, 0 }
  0x84   :  { %v120_v13 = vld [vmem:[#allocation1 + $0x6] ss:$9 sm:$0xff]  ;;  %v133_v41 = vperm.slane %v118_v12, 0  ;;  %v56_v47 = vrot.slane %v879_v10, 1  ;;  %v135_v48 = vperm.slane %v122_v14, 0  ;;  %v153_v49 = vmul.f32 %v129_v32, %v884_v30 }
  0x85   :  { %123 = vst [vmem:[#allocation1] sm:$0xff] %v879_v10  ;;  %v134_v46 = vperm.slane %v120_v13, 0  ;;  %v57_v50 = vrot.slane %v879_v10, 2  ;;  %v58_v51 = vrot.slane %v879_v10, 3  ;;  %v154_v56 = vmul.f32 %v130_v33, %v884_v30 }
  0x86   :  { %v155_v57 = vmul.f32 %v131_v34, %v884_v30  ;;  %v156_v58 = vmul.f32 %v132_v40, %v884_v30  ;;  %v157_v59 = vmul.f32 %v133_v41, %v884_v30  ;;  %v67_v61 = vperm.slane %v879_v10, 0 }
  0x87   :  { %v158_v60 = vmul.f32 %v134_v46, %v884_v30  ;;  %v68_v62 = vperm.slane %v56_v47, 0  ;;  %v159_v0 = vmul.f32 %v135_v48, %v884_v30  ;;  %v165_v1 = vadd.f32 %v153_v49, %v83_v38  ;;  %v247_v38 = vld [vmem:[#allocation2 + $0x10] sm:$0xf] }
  0x88   :  { %v69_v2 = vperm.slane %v57_v50, 0  ;;  %v70_v3 = vperm.slane %v58_v51, 0  ;;  %v166_v9 = vadd.f32 %v154_v56, %v84_v39  ;;  %v167_v11 = vadd.f32 %v155_v57, %v85_v44 }
  0x89   :  { %v168_v12 = vadd.f32 %v156_v58, %v86_v45  ;;  %v169_v13 = vadd.f32 %v157_v59, %v87_v52  ;;  %v170_v17 = vadd.f32 %v158_v60, %v88_v53  ;;  %v91_v18 = vmul.f32 %v67_v61, %v882_v25 }
  0x8a   :  { %v92_v19 = vmul.f32 %v68_v62, %v882_v25  ;;  %v93_v46 = vmul.f32 %v69_v2, %v882_v25  ;;  %v94_v47 = vmul.f32 %v70_v3, %v882_v25  ;;  %v171_v50 = vadd.f32 %v159_v0, %v89_v54 }
  0x8c   :  { %v124_v35 = vld [vmem:[#allocation1] ss:$9 sm:$0xff]  ;;  %v126_v37 = vld [vmem:[#allocation1 + $0x2] ss:$9 sm:$0xff] }
  0x8d   :  { %v125_v36 = vld [vmem:[#allocation1 + $0x1] ss:$9 sm:$0xff]  ;;  %v127_v42 = vld [vmem:[#allocation1 + $0x3] ss:$9 sm:$0xff]  ;;  %v136_v63 = vperm.slane %v124_v35, 0  ;;  %v138_v6 = vperm.slane %v126_v37, 0 }
  0x8e   :  { %v128_v43 = vld [vmem:[#allocation1 + $0x4] ss:$9 sm:$0xff]  ;;  %v137_v5 = vperm.slane %v125_v36, 0  ;;  %v139_v7 = vperm.slane %v127_v42, 0 }
  0x8f   :  { %178 = vst [vmem:[#allocation1] sm:$0xff] %v44_v4  ;;  %v905_v4 = vld [vmem:[#allocation2 + $0x8] sm:$0xf]  ;;  %v140_v8 = vperm.slane %v128_v43, 0  ;;  %v160_v20 = vmul.f32 %v136_v63, %v884_v30  ;;  %v162_v31 = vmul.f32 %v138_v6, %v884_v30 }
  0x90   :  { %v161_v29 = vmul.f32 %v137_v5, %v884_v30 }
  0x91   :  { %v164_v39 = vmul.f32 %v140_v8, %v884_v30  ;;  %v172_v51 = vadd.f32 %v160_v20, %v90_v55  ;;  %v174_v56 = vadd.f32 %v162_v31, %v92_v19 }
  0x93   :  { %v176_v58 = vadd.f32 %v164_v39, %v94_v47 }
  0x96   :  { %v180_v14 = vld [vmem:[#allocation1 + $0x2] ss:$9 sm:$0xff]  ;;  %v184_v16 = vld [vmem:[#allocation1 + $0x4] ss:$9 sm:$0xff] }
  0x97   :  { %v182_v15 = vld [vmem:[#allocation1 + $0x3] ss:$9 sm:$0xff]  ;;  %v186_v21 = vld [vmem:[#allocation1 + $0x5] ss:$9 sm:$0xff]  ;;  %v199_v24 = vperm.slane %v180_v14, 0  ;;  %v201_v27 = vperm.slane %v184_v16, 0 }
  0x98   :  { %v188_v22 = vld [vmem:[#allocation1 + $0x6] ss:$9 sm:$0xff]  ;;  %v200_v26 = vperm.slane %v182_v15, 0  ;;  %v202_v28 = vperm.slane %v186_v21, 0 }
  0x99   :  { %v190_v23 = vld [vmem:[#allocation1 + $0x7] ss:$9 sm:$0xff]  ;;  %v203_v32 = vperm.slane %v188_v22, 0  ;;  %v223_v34 = vmul.f32 %v199_v24, %v905_v4  ;;  %v225_v36 = vmul.f32 %v201_v27, %v905_v4 }
  0x9a   :  { %191 = vst [vmem:[#allocation1] sm:$0xff] %v879_v10  ;;  %v204_v33 = vperm.slane %v190_v23, 0  ;;  %v224_v35 = vmul.f32 %v200_v26, %v905_v4  ;;  %v226_v37 = vmul.f32 %v202_v28, %v905_v4  ;;  %v163_v10 = vmul.f32 %v139_v7, %v884_v30 }
  0x9b   :  { %v227_v40 = vmul.f32 %v203_v32, %v905_v4  ;;  %v235_v42 = vadd.f32 %v223_v34, %v165_v1  ;;  %v237_v44 = vadd.f32 %v225_v36, %v167_v11  ;;  %v173_v30 = vadd.f32 %v161_v29, %v91_v18 }
  0x9c   :  { %v228_v41 = vmul.f32 %v204_v33, %v905_v4  ;;  %v236_v43 = vadd.f32 %v224_v35, %v166_v9  ;;  %v238_v45 = vadd.f32 %v226_v37, %v168_v12  ;;  %v175_v57 = vadd.f32 %v163_v10, %v93_v46 }
  0x9d   :  { %v239_v48 = vadd.f32 %v227_v40, %v169_v13  ;;  %v248_v52 = vadd.f32 %v247_v38, %v235_v42  ;;  %v250_v2 = vadd.f32 %v247_v38, %v237_v44 }
  0x9e   :  { %v240_v49 = vadd.f32 %v228_v41, %v170_v17  ;;  %v923_v53 = vadd.f32 %v247_v38, %v236_v43  ;;  %v251_v5 = vadd.f32 %v247_v38, %v238_v45 }
  0x9f   :  { %v252_v25 = vadd.f32 %v247_v38, %v239_v48  ;;  %vm260_vm1 = vcmp.gt.f32.partialorder %v248_v52, 0.0  ;;  %vm262_vm3 = vcmp.gt.f32.partialorder %v250_v2, 0.0  ;;  %v272_v29 = vmul.f32 0.05, %v248_v52 }
  0xa0   :  { %v253_v3 = vadd.f32 %v247_v38, %v240_v49  ;;  %vm261_vm2 = vcmp.gt.f32.partialorder %v923_v53, 0.0  ;;  %vm263_vm4 = vcmp.gt.f32.partialorder %v251_v5, 0.0  ;;  %v274_v31 = vmul.f32 0.05, %v250_v2 }
  0xa1   :  { %v192_v59 = vld [vmem:[#allocation1] ss:$9 sm:$0xff]  ;;  %v195_v61 = vld [vmem:[#allocation1 + $0x2] ss:$9 sm:$0xff]  ;;  %vm264_vm6 = vcmp.gt.f32.partialorder %v252_v25, 0.0  ;;  %v284_v36 = vsel %vm260_vm1, %v248_v52, %v272_v29 }
  0xa2   :  { %v194_v60 = vld [vmem:[#allocation1 + $0x1] ss:$9 sm:$0xff]  ;;  %v196_v62 = vld [vmem:[#allocation1 + $0x3] ss:$9 sm:$0xff]  ;;  %v205_v6 = vperm.slane %v192_v59, 0  ;;  %v207_v55 = vperm.slane %v195_v61, 0  ;;  %v286_v42 = vsel %vm262_vm3, %v250_v2, %v274_v31 }
  0xa3   :  { %v197_v63 = vld [vmem:[#allocation1 + $0x4] ss:$9 sm:$0xff]  ;;  %v206_v54 = vperm.slane %v194_v60, 0  ;;  %v208_v0 = vperm.slane %v196_v62, 0  ;;  %vm265_vm7 = vcmp.gt.f32.partialorder %v253_v3, 0.0  ;;  %v297_v52 = vsel %vm296_vm5, %v284_v36, -inf }
  0xa4   :  { %v198_v1 = vld [vmem:[#allocation1 + $0x5] ss:$9 sm:$0xff]  ;;  %v209_v7 = vperm.slane %v197_v63, 0  ;;  %v229_v9 = vmul.f32 %v205_v6, %v905_v4  ;;  %v231_v12 = vmul.f32 %v207_v55, %v905_v4  ;;  %v275_v32 = vmul.f32 0.05, %v251_v5 }
  0xa5   :  { %v210_v8 = vperm.slane %v198_v1, 0  ;;  %v230_v11 = vmul.f32 %v206_v54, %v905_v4  ;;  %v232_v13 = vmul.f32 %v208_v0, %v905_v4  ;;  %v276_v33 = vmul.f32 0.05, %v252_v25  ;;  %v958_v61 = vld [vmem:[%s1112_s2] sm:$0xff]  ;;  %v328_v55 = vld [vmem:[#allocation2 + $0x20] sm:$0xff] }
  0xa6   :  { %v233_v14 = vmul.f32 %v209_v7, %v905_v4  ;;  %v241_v16 = vadd.f32 %v229_v9, %v171_v50  ;;  %v243_v18 = vadd.f32 %v231_v12, %v173_v30  ;;  %v277_v34 = vmul.f32 0.05, %v253_v3  ;;  %718 = vrot.lane.b32.xlu1 %v958_v61, %s837_s21 }
  0xa7   :  { %v234_v15 = vmul.f32 %v210_v8, %v905_v4  ;;  %v242_v17 = vadd.f32 %v230_v11, %v172_v51  ;;  %v244_v19 = vadd.f32 %v232_v13, %v174_v56  ;;  %v273_v4 = vmul.f32 0.05, %v923_v53 }
  0xa8   :  { %v245_v20 = vadd.f32 %v233_v14, %v175_v57  ;;  %v254_v22 = vadd.f32 %v247_v38, %v241_v16  ;;  %v256_v24 = vadd.f32 %v247_v38, %v243_v18  ;;  %v287_v43 = vsel %vm263_vm4, %v251_v5, %v275_v32  ;;  %v315_v5 = vld [vmem:[#allocation2 + $0x18] sm:$0xff] }
  0xa9   :  { %v246_v21 = vadd.f32 %v234_v15, %v176_v58  ;;  %v255_v23 = vadd.f32 %v247_v38, %v242_v17  ;;  %v257_v26 = vadd.f32 %v247_v38, %v244_v19  ;;  %v288_v44 = vsel %vm264_vm6, %v252_v25, %v276_v33  ;;  %v341_v19 = vld [vmem:[#allocation2 + $0x28] sm:$0xff]  ;;  %v994_v33 = vld [vmem:[%s1112_s2 + $0x8] sm:$0xff] }
  0xaa   :  { %v258_v27 = vadd.f32 %v247_v38, %v245_v20  ;;  %vm266_vm8 = vcmp.gt.f32.partialorder %v254_v22, 0.0  ;;  %vm268_vm10 = vcmp.gt.f32.partialorder %v256_v24, 0.0  ;;  %v278_v35 = vmul.f32 0.05, %v254_v22 }
  0xab   :  { %v259_v28 = vadd.f32 %v247_v38, %v246_v21  ;;  %vm267_vm9 = vcmp.gt.f32.partialorder %v255_v23, 0.0  ;;  %vm269_vm11 = vcmp.gt.f32.partialorder %v257_v26, 0.0  ;;  %v279_v37 = vmul.f32 0.05, %v255_v23 }
  0xac   :  { %vm270_vm12 = vcmp.gt.f32.partialorder %v258_v27, 0.0  ;;  %v280_v10 = vmul.f32 0.05, %v256_v24  ;;  %v281_v39 = vmul.f32 0.05, %v257_v26  ;;  %v285_v38 = vsel %vm261_vm2, %v923_v53, %v273_v4 }
  0xad   :  { %vm271_vm13 = vcmp.gt.f32.partialorder %v259_v28, 0.0  ;;  %v282_v40 = vmul.f32 0.05, %v258_v27  ;;  %v283_v41 = vmul.f32 0.05, %v259_v28  ;;  %v289_v45 = vsel %vm265_vm7, %v253_v3, %v277_v34  ;;  %v354_v34 = vld [vmem:[#allocation2 + $0x30] sm:$0xff] }
  0xae   :  { %v290_v46 = vsel %vm266_vm8, %v254_v22, %v278_v35  ;;  %v291_v47 = vsel %vm267_vm9, %v255_v23, %v279_v37  ;;  %v292_v48 = vsel %vm268_vm10, %v256_v24, %v280_v10  ;;  %v293_v49 = vsel %vm269_vm11, %v257_v26, %v281_v39  ;;  %720 = vrot.lane.b32.xlu1 %v994_v33, %s837_s21  ;;  %v367_v39 = vld [vmem:[#allocation2 + $0x38] sm:$0xff] }
  0xaf   :  { %v294_v50 = vsel %vm270_vm12, %v258_v27, %v282_v40  ;;  %v295_v51 = vsel %vm271_vm13, %v259_v28, %v283_v41  ;;  %v298_v53 = vsel %vm296_vm5, %v285_v38, -inf  ;;  %v300_v30 = vsel %vm296_vm5, %v286_v42, -inf }
  0xb0   :  { %v301_v56 = vsel %vm296_vm5, %v287_v43, -inf  ;;  %v299_v57 = vmax.f32 %v297_v52, %v298_v53  ;;  %v303_v59 = vsel %vm296_vm5, %v288_v44, -inf  ;;  %v304_v60 = vsel %vm296_vm5, %v289_v45, -inf }
  0xb1   :  { %v951_v58 = vmax.f32 %v300_v30, %v301_v56  ;;  %v305_v62 = vmax.f32 %v303_v59, %v304_v60  ;;  %v306_v63 = vsel %vm296_vm5, %v290_v46, -inf  ;;  %v307_v1 = vsel %vm296_vm5, %v291_v47, -inf }
  0xb2   :  { %v309_v2 = vsel %vm296_vm5, %v292_v48, -inf  ;;  %v308_v25 = vmax.f32 %v306_v63, %v307_v1  ;;  %v310_v3 = vsel %vm296_vm5, %v293_v49, -inf  ;;  %v312_v6 = vsel %vm296_vm5, %v294_v50, -inf }
  0xb3   :  { %v313_v54 = vsel %vm296_vm5, %v295_v51, -inf  ;;  %v968_v0 = vmax.f32 %v309_v2, %v310_v3  ;;  %v316_v8 = vperm.slane %v299_v57, 0  ;;  %v317_v9 = vperm.slane %v951_v58, 0  ;;  %v377_v51 = vld [vmem:[#allocation2 + $0x40] sm:$0xff] }
  0xb4   :  { %v970_v7 = vmax.f32 %v312_v6, %v313_v54  ;;  %v973_v11 = vperm.slane %v305_v62, 0  ;;  %v975_v12 = vperm.slane %v308_v25, 0  ;;  %v329_v13 = vperm.slane %v299_v57, 1 }
  0xb5   :  { %v330_v14 = vperm.slane %v951_v58, 1  ;;  %v320_v15 = vmul.f32 %v316_v8, %v315_v5  ;;  %v321_v16 = vmul.f32 %v317_v9, %v315_v5  ;;  %v978_v17 = vperm.slane %v305_v62, 1 }
  0xb6   :  { %v980_v18 = vperm.slane %v308_v25, 1  ;;  %v322_v20 = vmul.f32 %v973_v11, %v315_v5  ;;  %v323_v21 = vmul.f32 %v975_v12, %v315_v5  ;;  %v333_v22 = vmul.f32 %v329_v13, %v328_v55 }
  0xb7   :  { %v334_v23 = vmul.f32 %v330_v14, %v328_v55  ;;  %v335_v24 = vmul.f32 %v978_v17, %v328_v55  ;;  %v342_v27 = vperm.slane %v299_v57, 2  ;;  %v343_v28 = vperm.slane %v951_v58, 2 }
  0xb8   :  { %v336_v26 = vmul.f32 %v980_v18, %v328_v55  ;;  %v337_v29 = vadd.f32 %v333_v22, %v320_v15  ;;  %v987_v31 = vperm.slane %v305_v62, 2  ;;  %v989_v32 = vperm.slane %v308_v25, 2  ;;  %v397_v55 = vld [vmem:[#allocation2 + $0x50] sm:$0xff] }
  0xb9   :  { %v338_v4 = vadd.f32 %v334_v23, %v321_v16  ;;  %v339_v35 = vadd.f32 %v335_v24, %v322_v20  ;;  %v346_v37 = vmul.f32 %v342_v27, %v341_v19  ;;  %v347_v10 = vmul.f32 %v343_v28, %v341_v19 }
  0xba   :  { %v340_v36 = vadd.f32 %v336_v26, %v323_v21  ;;  %v348_v38 = vmul.f32 %v987_v31, %v341_v19  ;;  %v349_v40 = vmul.f32 %v989_v32, %v341_v19  ;;  %v355_v41 = vperm.slane %v299_v57, 3 }
  0xbb   :  { %v356_v42 = vperm.slane %v951_v58, 3  ;;  %v350_v43 = vadd.f32 %v346_v37, %v337_v29  ;;  %v351_v44 = vadd.f32 %v347_v10, %v338_v4  ;;  %v1001_v45 = vperm.slane %v305_v62, 3  ;;  %v387_v62 = vld [vmem:[#allocation2 + $0x48] sm:$0xff] }
  0xbc   :  { %v1003_v46 = vperm.slane %v308_v25, 3  ;;  %v352_v47 = vadd.f32 %v348_v38, %v339_v35  ;;  %v353_v48 = vadd.f32 %v349_v40, %v340_v36  ;;  %v359_v49 = vmul.f32 %v355_v41, %v354_v34 }
  0xbd   :  { %v360_v50 = vmul.f32 %v356_v42, %v354_v34  ;;  %v361_v52 = vmul.f32 %v1001_v45, %v354_v34  ;;  %v368_v30 = vperm.slane %v968_v0, 0  ;;  %v369_v56 = vmul.f32 %v367_v39, %v317_v9 }
  0xbe   :  { %v362_v53 = vmul.f32 %v1003_v46, %v354_v34  ;;  %v363_v57 = vadd.f32 %v359_v49, %v350_v43  ;;  %v370_v59 = vmul.f32 %v367_v39, %v973_v11  ;;  %v371_v60 = vmul.f32 %v367_v39, %v975_v12 }
  0xbf   :  { %v364_v58 = vadd.f32 %v360_v50, %v351_v44  ;;  %v365_v63 = vadd.f32 %v361_v52, %v352_v47  ;;  %v372_v2 = vmul.f32 %v368_v30, %v367_v39  ;;  %v378_v5 = vperm.slane %v968_v0, 1  ;;  %v417_v39 = vld [vmem:[#allocation2 + $0x60] sm:$0xff]  ;;  %v1026_v52 = vld [vmem:[%s1112_s2 + $0x10] sm:$0xff] }
  0xc0   :  { %v366_v1 = vadd.f32 %v362_v53, %v353_v48  ;;  %v373_v25 = vadd.f32 %v369_v56, %v363_v57  ;;  %v379_v6 = vmul.f32 %v377_v51, %v330_v14  ;;  %v380_v54 = vmul.f32 %v377_v51, %v978_v17  ;;  %v407_v14 = vld [vmem:[#allocation2 + $0x58] sm:$0xff]  ;;  %722 = vrot.lane.b32.xlu2 %v1026_v52, %s837_s21 }
  0xc1   :  { %v374_v3 = vadd.f32 %v370_v59, %v364_v58  ;;  %v375_v8 = vadd.f32 %v371_v60, %v365_v63  ;;  %v381_v13 = vmul.f32 %v377_v51, %v980_v18  ;;  %v382_v15 = vmul.f32 %v378_v5, %v377_v51 }
  0xc2   :  { %v376_v9 = vadd.f32 %v372_v2, %v366_v1  ;;  %v383_v16 = vadd.f32 %v379_v6, %v373_v25  ;;  %v388_v20 = vperm.slane %v968_v0, 2  ;;  %v389_v21 = vmul.f32 %v387_v62, %v343_v28 }
  0xc3   :  { %v384_v19 = vadd.f32 %v380_v54, %v374_v3  ;;  %v385_v22 = vadd.f32 %v381_v13, %v375_v8  ;;  %v390_v24 = vmul.f32 %v387_v62, %v987_v31  ;;  %v391_v26 = vmul.f32 %v387_v62, %v989_v32 }
  0xc4   :  { %v386_v23 = vadd.f32 %v382_v15, %v376_v9  ;;  %v392_v27 = vmul.f32 %v388_v20, %v387_v62  ;;  %v393_v29 = vadd.f32 %v389_v21, %v383_v16  ;;  %v398_v4 = vperm.slane %v968_v0, 3  ;;  %v427_v0 = vld [vmem:[#allocation2 + $0x68] sm:$0xff]  ;;  %v447_v9 = vld [vmem:[#allocation2 + $0x78] sm:$0xff] }
  0xc5   :  { %v399_v34 = vmul.f32 %v397_v55, %v356_v42  ;;  %v394_v35 = vadd.f32 %v390_v24, %v384_v19  ;;  %v395_v36 = vadd.f32 %v391_v26, %v385_v22  ;;  %v400_v37 = vmul.f32 %v397_v55, %v1001_v45 }
  0xc6   :  { %v401_v10 = vmul.f32 %v397_v55, %v1003_v46  ;;  %v396_v28 = vadd.f32 %v392_v27, %v386_v23  ;;  %v402_v38 = vmul.f32 %v398_v4, %v397_v55  ;;  %v408_v41 = vperm.slane %v970_v7, 0 }
  0xc7   :  { %v403_v40 = vadd.f32 %v399_v34, %v393_v29  ;;  %v404_v43 = vadd.f32 %v400_v37, %v394_v35  ;;  %v409_v47 = vmul.f32 %v407_v14, %v973_v11  ;;  %v410_v48 = vmul.f32 %v407_v14, %v975_v12  ;;  %v437_v11 = vld [vmem:[#allocation2 + $0x70] sm:$0xff] }
  0xc8   :  { %v405_v44 = vadd.f32 %v401_v10, %v395_v36  ;;  %v406_v42 = vadd.f32 %v402_v38, %v396_v28  ;;  %v411_v49 = vmul.f32 %v407_v14, %v368_v30  ;;  %v412_v50 = vmul.f32 %v408_v41, %v407_v14  ;;  %v468_v10 = vld [vmem:[#allocation2 + $0x80] sm:$0xff]  ;;  %v475_v38 = vld [vmem:[#allocation2 + $0x90] sm:$0xff] }
  0xc9   :  { %v418_v51 = vperm.slane %v970_v7, 1  ;;  %v413_v53 = vadd.f32 %v409_v47, %v403_v40  ;;  %v414_v56 = vadd.f32 %v410_v48, %v404_v43  ;;  %v419_v57 = vmul.f32 %v417_v39, %v978_v17  ;;  %v476_v40 = vld [vmem:[#allocation2 + $0x98] sm:$0xff]  ;;  %v466_v43 = vld [vmem:[#allocation2 + $0x180] sm:$0xff] }
  0xca   :  { %v420_v58 = vmul.f32 %v417_v39, %v980_v18  ;;  %v415_v12 = vadd.f32 %v411_v49, %v405_v44  ;;  %v416_v30 = vadd.f32 %v412_v50, %v406_v42  ;;  %v421_v59 = vmul.f32 %v417_v39, %v378_v5  ;;  %v467_v44 = vld [vmem:[#allocation2 + $0x188] sm:$0xff]  ;;  %v482_v49 = vld [vmem:[#allocation2 + $0xa0] sm:$0xff] }
  0xcb   :  { %v422_v60 = vmul.f32 %v418_v51, %v417_v39  ;;  %v423_v62 = vadd.f32 %v419_v57, %v413_v53  ;;  %v428_v1 = vperm.slane %v970_v7, 2  ;;  %v429_v2 = vmul.f32 %v427_v0, %v987_v31  ;;  %v469_v39 = vld [vmem:[#allocation2 + $0x88] sm:$0xff] }
  0xcc   :  { %v424_v63 = vadd.f32 %v420_v58, %v414_v56  ;;  %v425_v25 = vadd.f32 %v421_v59, %v415_v12  ;;  %v430_v17 = vmul.f32 %v427_v0, %v989_v32  ;;  %v431_v6 = vmul.f32 %v427_v0, %v388_v20  ;;  %v1041_v32 = vld [vmem:[%s1112_s2 + $0x18] sm:$0xff]  ;;  %v483_v50 = vld [vmem:[#allocation2 + $0xa8] sm:$0xff]  ;;  %v490_v12 = vld [vmem:[#allocation2 + $0xb8] sm:$0xff]  ;;  %s838_s2 = smov 127  }
  0xcd   :  { %v426_v3 = vadd.f32 %v422_v60, %v416_v30  ;;  %v432_v18 = vmul.f32 %v428_v1, %v427_v0  ;;  %v433_v54 = vadd.f32 %v429_v2, %v423_v62  ;;  %v438_v55 = vperm.slane %v970_v7, 3  ;;  %724 = vrot.lane.b32.xlu2 %v1041_v32, %s837_s21  ;;  %v496_v1 = vld [vmem:[#allocation2 + $0xc0] sm:$0xff]  ;;  %v497_v2 = vld [vmem:[#allocation2 + $0xc8] sm:$0xff] }
  0xce   :  { %v439_v8 = vmul.f32 %v437_v11, %v1001_v45  ;;  %v434_v5 = vadd.f32 %v430_v17, %v424_v63  ;;  %v435_v13 = vadd.f32 %v431_v6, %v425_v25  ;;  %v440_v15 = vmul.f32 %v437_v11, %v1003_v46 }
  0xcf   :  { %v441_v16 = vmul.f32 %v437_v11, %v398_v4  ;;  %v436_v19 = vadd.f32 %v432_v18, %v426_v3  ;;  %v442_v21 = vmul.f32 %v438_v55, %v437_v11  ;;  %v489_v11 = vld [vmem:[#allocation2 + $0xb0] sm:$0xff]  ;;  %v504_v55 = vld [vmem:[#allocation2 + $0xd8] sm:$0xff]  ;;  %vm787_vm3 = vcmask 1040384  }
  0xd0   :  { %v443_v31 = vadd.f32 %v439_v8, %v433_v54  ;;  %v444_v22 = vadd.f32 %v440_v15, %v434_v5  ;;  %v503_v54 = vld [vmem:[#allocation2 + $0xd0] sm:$0xff]  ;;  %vm793_vm4 = vcmask 1024  }
  0xd1   :  { %v445_v23 = vadd.f32 %v441_v16, %v435_v13  ;;  %v446_v20 = vadd.f32 %v442_v21, %v436_v19  ;;  %v511_v19 = vld [vmem:[#allocation2 + $0xe8] sm:$0xff] }
  0xd2   :  { %v448_v7 = vadd.f32 %v447_v9, %v443_v31  ;;  %v449_v45 = vadd.f32 %v447_v9, %v444_v22  ;;  %v517_v31 = vld [vmem:[#allocation2 + $0xf0] sm:$0xff] }
  0xd3   :  { %v450_v24 = vadd.f32 %v447_v9, %v445_v23  ;;  %v451_v26 = vadd.f32 %v447_v9, %v446_v20  ;;  %v510_v9 = vld [vmem:[#allocation2 + $0xe0] sm:$0xff] }
  0xd4   :  { %vm452_vm14 = vcmp.gt.f32.partialorder %v448_v7, 0.0  ;;  %v456_v46 = vmul.f32 0.05, %v448_v7  ;;  %vm453_vm15 = vcmp.gt.f32.partialorder %v449_v45, 0.0  ;;  %v457_v14 = vmul.f32 0.05, %v449_v45 }
  0xd5   :  { %vm454_vm1 = vcmp.gt.f32.partialorder %v450_v24, 0.0  ;;  %v458_v27 = vmul.f32 0.05, %v450_v24  ;;  %vm455_vm2 = vcmp.gt.f32.partialorder %v451_v26, 0.0  ;;  %v459_v29 = vmul.f32 0.05, %v451_v26 }
  0xd6   :  { %v460_v4 = vsel %vm452_vm14, %v448_v7, %v456_v46  ;;  %v461_v34 = vsel %vm453_vm15, %v449_v45, %v457_v14  ;;  %v518_v45 = vld [vmem:[#allocation2 + $0xf8] sm:$0xff] }
  0xd7   :  { %v462_v35 = vsel %vm454_vm1, %v450_v24, %v458_v27  ;;  %v463_v36 = vsel %vm455_vm2, %v451_v26, %v459_v29  ;;  %v1045_v37 = vmax.f32 %v460_v4, %v461_v34  ;;  %v524_v29 = vld [vmem:[#allocation2 + $0x100] sm:$0xff]  ;;  %v525_v4 = vld [vmem:[#allocation2 + $0x108] sm:$0xff] }
  0xd8   :  { %v1047_v28 = vmax.f32 %v462_v35, %v463_v36 }
  0xd9   :  { %v470_v41 = vperm.slane %v1045_v37, 0  ;;  %v484_v42 = vperm.slane %v1045_v37, 1  ;;  %v498_v30 = vperm.slane %v1045_v37, 2  ;;  %v512_v8 = vperm.slane %v1045_v37, 3 }
  0xda   :  { %v477_v47 = vperm.slane %v1047_v28, 0  ;;  %v491_v58 = vperm.slane %v1047_v28, 1  ;;  %v505_v25 = vperm.slane %v1047_v28, 2  ;;  %v519_v21 = vperm.slane %v1047_v28, 3 }
  0xdb   :  { %v471_v48 = vmul.f32 %v470_v41, %v468_v10  ;;  %v472_v0 = vmul.f32 %v470_v41, %v469_v39  ;;  %v485_v62 = vmul.f32 %v484_v42, %v482_v49  ;;  %v486_v63 = vmul.f32 %v484_v42, %v483_v50 }
  0xdc   :  { %v478_v51 = vmul.f32 %v477_v47, %v475_v38  ;;  %v479_v53 = vmul.f32 %v477_v47, %v476_v40  ;;  %v492_v6 = vmul.f32 %v491_v58, %v489_v11  ;;  %v493_v18 = vmul.f32 %v491_v58, %v490_v12  ;;  %v531_v38 = vld [vmem:[#allocation2 + $0x110] sm:$0xff]  ;;  %v532_v40 = vld [vmem:[#allocation2 + $0x118] sm:$0xff] }
  0xdd   :  { %v473_v56 = vadd.f32 %v471_v48, %v466_v43  ;;  %v474_v57 = vadd.f32 %v472_v0, %v467_v44  ;;  %v499_v15 = vmul.f32 %v498_v30, %v496_v1  ;;  %v500_v16 = vmul.f32 %v498_v30, %v497_v2  ;;  %v538_v0 = vld [vmem:[#allocation2 + $0x120] sm:$0xff]  ;;  %v546_v2 = vld [vmem:[#allocation2 + $0x138] sm:$0xff] }
  0xde   :  { %v506_v20 = vmul.f32 %v505_v25, %v503_v54  ;;  %v507_v7 = vmul.f32 %v505_v25, %v504_v55  ;;  %v513_v24 = vmul.f32 %v512_v8, %v510_v9  ;;  %v514_v14 = vmul.f32 %v512_v8, %v511_v19  ;;  %v559_v25 = vld [vmem:[#allocation2 + $0x150] sm:$0xff]  ;;  %v566_v54 = vld [vmem:[#allocation2 + $0x160] sm:$0xff] }
  0xdf   :  { %v480_v59 = vadd.f32 %v478_v51, %v473_v56  ;;  %v481_v60 = vadd.f32 %v479_v53, %v474_v57  ;;  %v526_v27 = vperm.slane %v1045_v37, 4  ;;  %v520_v34 = vmul.f32 %v519_v21, %v517_v31  ;;  %v539_v56 = vld [vmem:[#allocation2 + $0x128] sm:$0xff]  ;;  %v545_v57 = vld [vmem:[#allocation2 + $0x130] sm:$0xff] }
  0xe0   :  { %v521_v10 = vmul.f32 %v519_v21, %v518_v45  ;;  %v533_v39 = vperm.slane %v1047_v28, 4  ;;  %v540_v41 = vperm.slane %v1045_v37, 5  ;;  %v547_v42 = vperm.slane %v1047_v28, 5 }
  0xe1   :  { %v487_v3 = vadd.f32 %v485_v62, %v480_v59  ;;  %v488_v17 = vadd.f32 %v486_v63, %v481_v60  ;;  %v527_v47 = vmul.f32 %v526_v27, %v524_v29  ;;  %v528_v48 = vmul.f32 %v526_v27, %v525_v4  ;;  %v552_v59 = vld [vmem:[#allocation2 + $0x140] sm:$0xff]  ;;  %v580_v27 = vld [vmem:[#allocation2 + $0x210] sm:$0xff]  ;;  %v585_v29 = vld [vmem:[#allocation2 + $0x198] sm:$0xff] }
  0xe2   :  { %v534_v51 = vmul.f32 %v533_v39, %v531_v38  ;;  %v535_v53 = vmul.f32 %v533_v39, %v532_v40  ;;  %v541_v12 = vmul.f32 %v540_v41, %v538_v0  ;;  %v554_v30 = vperm.slane %v1045_v37, 6  ;;  %v574_v40 = vld [vmem:[#allocation2 + $0x178] sm:$0xff]  ;;  %v597_v0 = vld [vmem:[#allocation2 + $0x1b0] sm:$0xff] }
  0xe3   :  { %v494_v5 = vadd.f32 %v492_v6, %v487_v3  ;;  %v495_v13 = vadd.f32 %v493_v18, %v488_v17  ;;  %v542_v60 = vmul.f32 %v540_v41, %v539_v56  ;;  %v548_v63 = vmul.f32 %v547_v42, %v545_v57  ;;  %v593_v41 = vld [vmem:[#allocation2 + $0x1a8] sm:$0xff] }
  0xe4   :  { %v561_v1 = vperm.slane %v1047_v28, 6  ;;  %v555_v6 = vmul.f32 %v554_v30, %v552_v59  ;;  %v568_v18 = vperm.slane %v1045_v37, 7  ;;  %v549_v55 = vmul.f32 %v547_v42, %v546_v2 }
  0xe5   :  { %v501_v22 = vadd.f32 %v499_v15, %v494_v5  ;;  %v502_v23 = vadd.f32 %v500_v16, %v495_v13  ;;  %v575_v5 = vperm.slane %v1047_v28, 7  ;;  %v553_v13 = vld [vmem:[#allocation2 + $0x148] sm:$0xff]  ;;  %v573_v15 = vld [vmem:[#allocation2 + $0x170] sm:$0xff] }
  0xe6   :  { %v562_v9 = vmul.f32 %v561_v1, %v559_v25  ;;  %v569_v21 = vmul.f32 %v568_v18, %v566_v54  ;;  %v556_v31 = vmul.f32 %v554_v30, %v553_v13  ;;  %v613_v25 = vld [vmem:[#allocation2 + $0x1d0] sm:$0xff] }
  0xe7   :  { %v508_v26 = vadd.f32 %v506_v20, %v501_v22  ;;  %v509_v46 = vadd.f32 %v507_v7, %v502_v23  ;;  %v576_v23 = vmul.f32 %v575_v5, %v573_v15  ;;  %v560_v20 = vld [vmem:[#allocation2 + $0x158] sm:$0xff]  ;;  %v577_v42 = vmul.f32 %v575_v5, %v574_v40 }
  0xe9   :  { %v515_v35 = vadd.f32 %v513_v24, %v508_v26  ;;  %v516_v36 = vadd.f32 %v514_v14, %v509_v46  ;;  %v581_v24 = vld [vmem:[#allocation2 + $0x190] sm:$0xff]  ;;  %v563_v26 = vmul.f32 %v561_v1, %v560_v20  ;;  %v567_v14 = vld [vmem:[#allocation2 + $0x168] sm:$0xff] }
  0xeb   :  { %v522_v43 = vadd.f32 %v520_v34, %v515_v35  ;;  %v523_v44 = vadd.f32 %v521_v10, %v516_v36  ;;  %v589_v35 = vld [vmem:[#allocation2 + $0x1a0] sm:$0xff]  ;;  %v570_v36 = vmul.f32 %v568_v18, %v567_v14  ;;  %v617_v18 = vld [vmem:[#allocation2 + $0x1d8] sm:$0xff] }
  0xed   :  { %v529_v49 = vadd.f32 %v527_v47, %v522_v43  ;;  %v530_v50 = vadd.f32 %v528_v48, %v523_v44 }
  0xef   :  { %v536_v58 = vadd.f32 %v534_v51, %v529_v49  ;;  %v537_v11 = vadd.f32 %v535_v53, %v530_v50  ;;  %v601_v53 = vld [vmem:[#allocation2 + $0x1b8] sm:$0xff] }
  0xf1   :  { %v543_v62 = vadd.f32 %v541_v12, %v536_v58  ;;  %v544_v3 = vadd.f32 %v542_v60, %v537_v11  ;;  %v605_v12 = vld [vmem:[#allocation2 + $0x1c0] sm:$0xff] }
  0xf3   :  { %v550_v17 = vadd.f32 %v548_v63, %v543_v62  ;;  %v551_v16 = vadd.f32 %v549_v55, %v544_v3  ;;  %v609_v62 = vld [vmem:[#allocation2 + $0x1c8] sm:$0xff] }
  0xf5   :  { %v557_v8 = vadd.f32 %v555_v6, %v550_v17  ;;  %v558_v7 = vadd.f32 %v556_v31, %v551_v16  ;;  %v625_v16 = vld [vmem:[#allocation2 + $0x1e8] sm:$0xff] }
  0xf7   :  { %v564_v19 = vadd.f32 %v562_v9, %v557_v8  ;;  %v565_v4 = vadd.f32 %v563_v26, %v558_v7  ;;  %v621_v9 = vld [vmem:[#allocation2 + $0x1e0] sm:$0xff] }
  0xf9   :  { %v571_v22 = vadd.f32 %v569_v21, %v564_v19  ;;  %v572_v43 = vadd.f32 %v570_v36, %v565_v4  ;;  %v641_v4 = vld [vmem:[#allocation2 + $0x208] sm:$0xff] }
  0xfb   :  { %v578_v45 = vadd.f32 %v576_v23, %v571_v22  ;;  %v579_v56 = vadd.f32 %v577_v42, %v572_v43  ;;  %v629_v22 = vld [vmem:[#allocation2 + $0x1f0] sm:$0xff] }
  0xfd   :  { %v582_v37 = vperm.slane %v578_v45, 0  ;;  %v586_v46 = vperm.slane %v578_v45, 1  ;;  %v590_v34 = vperm.slane %v578_v45, 2  ;;  %v594_v38 = vperm.slane %v578_v45, 3 }
  0xfe   :  { %v598_v48 = vperm.slane %v578_v45, 4  ;;  %v602_v51 = vperm.slane %v578_v45, 5  ;;  %v606_v11 = vperm.slane %v578_v45, 6  ;;  %v610_v60 = vperm.slane %v578_v45, 7  ;;  %v633_v45 = vld [vmem:[#allocation2 + $0x1f8] sm:$0xff] }
  0xff   :  { %v583_v28 = vmul.f32 %v582_v37, %v581_v24  ;;  %v587_v39 = vmul.f32 %v586_v46, %v585_v29  ;;  %v591_v47 = vmul.f32 %v590_v34, %v589_v35  ;;  %v595_v50 = vmul.f32 %v594_v38, %v593_v41  ;;  %v637_v46 = vld [vmem:[#allocation2 + $0x200] sm:$0xff] }
 0x100   :  { %v599_v58 = vmul.f32 %v598_v48, %v597_v0  ;;  %v603_v59 = vmul.f32 %v602_v51, %v601_v53  ;;  %v607_v1 = vmul.f32 %v606_v11, %v605_v12  ;;  %v614_v2 = vperm.slane %v579_v56, 0  ;;  %v653_v0 = vld [vmem:[#allocation2 + $0x220] sm:$0x1] }
 0x101   :  { %v584_v10 = vadd.f32 %v583_v28, %v580_v27  ;;  %v611_v17 = vmul.f32 %v610_v60, %v609_v62  ;;  %v618_v6 = vperm.slane %v579_v56, 1  ;;  %v622_v8 = vperm.slane %v579_v56, 2 }
 0x102   :  { %v615_v55 = vmul.f32 %v614_v2, %v613_v25  ;;  %v626_v15 = vperm.slane %v579_v56, 3  ;;  %v630_v31 = vperm.slane %v579_v56, 4  ;;  %v634_v7 = vperm.slane %v579_v56, 5 }
 0x103   :  { %v588_v44 = vadd.f32 %v587_v39, %v584_v10  ;;  %v619_v13 = vmul.f32 %v618_v6, %v617_v18  ;;  %v623_v21 = vmul.f32 %v622_v8, %v621_v9  ;;  %v638_v37 = vperm.slane %v579_v56, 6  ;;  %v645_v10 = vld [vmem:[#allocation2 + $0x218] sm:$0xff] }
 0x104   :  { %v627_v20 = vmul.f32 %v626_v15, %v625_v16  ;;  %v631_v26 = vmul.f32 %v630_v31, %v629_v22  ;;  %v635_v27 = vmul.f32 %v634_v7, %v633_v45  ;;  %v642_v29 = vperm.slane %v579_v56, 7 }
 0x105   :  { %v592_v49 = vadd.f32 %v591_v47, %v588_v44  ;;  %v639_v34 = vmul.f32 %v638_v37, %v637_v46 }
 0x106   :  { %v643_v36 = vmul.f32 %v642_v29, %v641_v4 }
 0x107   :  { %v596_v57 = vadd.f32 %v595_v50, %v592_v49 }
 0x109   :  { %v600_v30 = vadd.f32 %v599_v58, %v596_v57 }
 0x10b   :  { %v604_v63 = vadd.f32 %v603_v59, %v600_v30 }
 0x10d   :  { %v608_v3 = vadd.f32 %v607_v1, %v604_v63 }
 0x10f   :  { %v612_v54 = vadd.f32 %v611_v17, %v608_v3 }
 0x111   :  { %v616_v5 = vadd.f32 %v615_v55, %v612_v54 }
 0x113   :  { %v620_v19 = vadd.f32 %v619_v13, %v616_v5 }
 0x115   :  { %v624_v23 = vadd.f32 %v623_v21, %v620_v19 }
 0x117   :  { %v628_v24 = vadd.f32 %v627_v20, %v624_v23 }
 0x118   :  { %v719_v43 = vpop.permute.xlu1 %718 }
 0x119   :  { %v632_v14 = vadd.f32 %v631_v26, %v628_v24 }
 0x11a   :  { %v723_v49 = vpop.permute.xlu2 %722 }
 0x11b   :  { %v636_v28 = vadd.f32 %v635_v27, %v632_v14 }
 0x11d   :  { %v640_v35 = vadd.f32 %v639_v34, %v636_v28 }
 0x11f   :  { %v644_v39 = vadd.f32 %v643_v36, %v640_v35 }
 0x120   :  { %v721_v51 = vpop.permute.xlu1 %720 }
 0x121   :  { %v646_v38 = vmul.f32 %v645_v10, %v644_v39 }
 0x123   :  { %v647_v40 = vrot.slane %v646_v38, 4 }
 0x125   :  { %v648_v41 = vadd.f32 %v647_v40, %v646_v38 }
 0x127   :  { %v649_v44 = vrot.slane %v648_v41, 2  ;;  %v725_v11 = vpop.permute.xlu2 %724 }
 0x129   :  { %v650_v47 = vadd.f32 %v649_v44, %v648_v41 }
 0x12b   :  { %v651_v48 = vrot.slane %v650_v47, 1 }
 0x12d   :  { %v652_v42 = vadd.f32 %v651_v48, %v650_v47 }
 0x12f   :  { %v654_v50 = vadd.f32 %v653_v0, %v652_v42 }
 0x131   :  { %v659_v53 = vperm.slane %v654_v50, 0 }
 0x133   :  { %v732_v56 = vmul.f32 %v723_v49, %v659_v53  ;;  %v730_v57 = vmul.f32 %v719_v43, %v659_v53  ;;  %v731_v58 = vmul.f32 %v721_v51, %v659_v53  ;;  %v733_v12 = vmul.f32 %v725_v11, %v659_v53 }
 0x134   :  { %v662_v30 = vmul.f32 %v659_v53, %v1026_v52  ;;  %v661_v60 = vmul.f32 %v659_v53, %v994_v33  ;;  %v660_v63 = vmul.f32 %v659_v53, %v958_v61  ;;  %v663_v2 = vmul.f32 %v659_v53, %v1041_v32 }
 0x135   :  { %742 = vrot.lane.b32.xlu2 %v732_v56, %s837_s21  ;;  %740 = vrot.lane.b32.xlu1 %v731_v58, %s837_s21 }
 0x136   :  { %738 = vrot.lane.b32.xlu0 %v730_v57, %s837_s21  ;;  %v670_v59 = vsel %vm43_vm0, %v662_v30, 0.0  ;;  %v667_v62 = vsel %vm43_vm0, %v661_v60, 0.0  ;;  %v664_v1 = vsel %vm43_vm0, %v660_v63, 0.0  ;;  %v673_v25 = vsel %vm43_vm0, %v663_v2, 0.0 }
 0x13d   :  { %684 = vrot.lane.b32.xlu2 %v958_v61, %s838_s2 }
 0x13e   :  { %744 = vrot.lane.b32.xlu0 %v733_v12, %s837_s21 }
 0x146   :  { %686 = vrot.lane.b32.xlu0 %v994_v33, %s838_s2 }
 0x15f   :  { %671 = vadd.xlane.f32.xlu1 %v670_v59 }
 0x166   :  { %668 = vadd.xlane.f32.xlu2 %v667_v62 }
 0x170   :  { %665 = vadd.xlane.f32.xlu0 %v664_v1 }
 0x178   :  { %674 = vadd.xlane.f32.xlu0 %v673_v25 }
 0x18f   :  { %v743_v54 = vpop.permute.xlu2 %742 }
 0x190   :  { %v756_v55 = vsel %vm43_vm0, %v743_v54, 0.0 }
 0x197   :  { %v685_v13 = vpop.permute.xlu2 %684 }
 0x1a7   :  { %v741_v3 = vpop.permute.xlu1 %740 }
 0x1a8   :  { %v739_v17 = vpop.permute.xlu0 %738  ;;  %v753_v6 = vsel %vm43_vm0, %v741_v3, 0.0 }
 0x1a9   :  { %v750_v18 = vsel %vm43_vm0, %v739_v17, 0.0  ;;  %754 = vadd.xlane.f32.xlu2 %v753_v6 }
 0x1aa   :  { %751 = vadd.xlane.f32.xlu1 %v750_v18 }
 0x1b0   :  { %v745_v8 = vpop.permute.xlu0 %744 }
 0x1b1   :  { %v759_v9 = vsel %vm43_vm0, %v745_v8, 0.0  ;;  %vm700_vm0 = vcmask 531968  }
 0x1b2   :  { %757 = vadd.xlane.f32.xlu1 %v756_v55 }
 0x1b8   :  { %v687_v16 = vpop.permute.xlu0 %686 }
 0x1ba   :  { %760 = vadd.xlane.f32.xlu1 %v759_v9 }
 0x1c1   :  { %690 = vrot.lane.b32.xlu2 %v1041_v32, %s838_s2 }
 0x1c9   :  { %714 = vrot.lane.b32.xlu2 %v958_v61, %s839_s7 }
 0x1d2   :  { %v672_v5 = vpop.xlane.xlu1 %671 }
 0x1d3   :  { %688 = vrot.lane.b32.xlu1 %v1026_v52, %s838_s2  ;;  %v678_v4 = vadd.f32 %v672_v5, %v1026_v52 }
 0x1d9   :  { %v669_v19 = vpop.xlane.xlu2 %668 }
 0x1da   :  { %v677_v45 = vadd.f32 %v669_v19, %v994_v33 }
 0x1dc   :  { %v697_v14 = vmul.f32 %v687_v16, %v677_v45 }
 0x1de   :  { %v702_v10 = vsel %vm700_vm0, %v697_v14, 0.0 }
 0x1e3   :  { %v666_v31 = vpop.xlane.xlu0 %665 }
 0x1e4   :  { %v676_v23 = vadd.f32 %v666_v31, %v958_v61 }
 0x1e6   :  { %v696_v26 = vmul.f32 %v685_v13, %v676_v23 }
 0x1e8   :  { %v701_v28 = vsel %vm700_vm0, %v696_v26, 0.0 }
 0x1e9   :  { %v703_v44 = vadd.f32 %v702_v10, %v701_v28 }
 0x1eb   :  { %v675_v27 = vpop.xlane.xlu0 %674 }
 0x21c   :  { %v755_v22 = vpop.xlane.xlu2 %754 }
 0x21d   :  { %v752_v15 = vpop.xlane.xlu1 %751  ;;  %v763_v7 = vadd.f32 %v755_v22, %v994_v33 }
 0x21e   :  { %v762_v20 = vadd.f32 %v752_v15, %v958_v61  ;;  %v679_v61 = vadd.f32 %v675_v27, %v1041_v32 }
 0x21f   :  { %v767_v46 = vmul.f32 %v763_v7, %v687_v16 }
 0x220   :  { %v766_v37 = vmul.f32 %v762_v20, %v685_v13 }
 0x221   :  { %v771_v33 = vsel %vm700_vm0, %v767_v46, 0.0 }
 0x222   :  { %v770_v35 = vsel %vm700_vm0, %v766_v37, 0.0 }
 0x223   :  { %v772_v47 = vadd.f32 %v771_v33, %v770_v35 }
 0x224   :  { %v691_v34 = vpop.permute.xlu2 %690 }
 0x225   :  { %v758_v21 = vpop.xlane.xlu1 %757  ;;  %v699_v38 = vmul.f32 %v691_v34, %v679_v61 }
 0x226   :  { %v764_v36 = vadd.f32 %v758_v21, %v1026_v52 }
 0x227   :  { %v706_v49 = vsel %vm700_vm0, %v699_v38, 0.0 }
 0x22c   :  { %v715_v63 = vpop.permute.xlu2 %714 }
 0x22d   :  { %v761_v24 = vpop.xlane.xlu1 %760 }
 0x22e   :  { %v765_v29 = vadd.f32 %v761_v24, %v1041_v32 }
 0x230   :  { %v769_v40 = vmul.f32 %v765_v29, %v691_v34 }
 0x232   :  { %v775_v50 = vsel %vm700_vm0, %v769_v40, 0.0 }
 0x245   :  { %v689_v39 = vpop.permute.xlu1 %688 }
 0x246   :  { %v698_v41 = vmul.f32 %v689_v39, %v678_v4  ;;  %v768_v43 = vmul.f32 %v764_v36, %v689_v39 }
 0x248   :  { %v704_v48 = vsel %vm700_vm0, %v698_v41, 0.0  ;;  %v773_v0 = vsel %vm700_vm0, %v768_v43, 0.0 }
 0x249   :  { %v705_v32 = vadd.f32 %v704_v48, %v703_v44  ;;  %v774_v42 = vadd.f32 %v773_v0, %v772_v47 }
 0x24b   :  { %v707_v52 = vadd.f32 %v706_v49, %v705_v32  ;;  %v776_v51 = vadd.f32 %v775_v50, %v774_v42 }
 0x24d   :  { %v708_v53 = vrot.slane %v707_v52, 4  ;;  %v777_v56 = vrot.slane %v776_v51, 4 }
 0x24f   :  { %v709_v57 = vadd.f32 %v708_v53, %v707_v52  ;;  %v778_v58 = vadd.f32 %v777_v56, %v776_v51 }
 0x251   :  { %v779_v11 = vrot.slane %v778_v58, 2  ;;  %v710_v12 = vrot.slane %v709_v57, 2 }
 0x253   :  { %v780_v30 = vadd.f32 %v779_v11, %v778_v58  ;;  %v711_v59 = vadd.f32 %v710_v12, %v709_v57 }
 0x255   :  { %v781_v60 = vrot.slane %v780_v30, 1  ;;  %v712_v62 = vrot.slane %v711_v59, 1 }
 0x257   :  { %v782_v1 = vadd.f32 %v781_v60, %v780_v30  ;;  %v713_v2 = vadd.f32 %v712_v62, %v711_v59 }
 0x259   :  { %v783_v25 = vadd.f32 %v782_v1, %v715_v63  ;;  %v717_v3 = vadd.f32 %v715_v63, %v713_v2 }
 0x25b   :  { %v785_v17 = vrot.slane %v783_v25, 7 }
 0x25d   :  { %v788_v6 = vsel %vm787_vm3, %v717_v3, %v785_v17 }
 0x25e   :  { %790 = vrot.lane.b32.xlu2 %v788_v6, %s837_s21 }
 0x2b8   :  { %v791_v18 = vpop.permute.xlu2 %790 }
 0x2b9   :  { %794 = vst.msk [vmem:[%s1113_s3] sm:$0x3] %vm793_vm4, %v791_v18 }
 0x2ba   :  { %799 = vsyncpa [#allocation3], 1 }

</bundles_post_ra>
